<compile_context>
chip_gen: v7x
topology: tpu7x:2x2x1
jax: 0.10.0
libtpu: 0.0.40
codegen_flags: <defaults>
</compile_context>

<pallas_src>
import jax
import jax.numpy as jnp
from jax.experimental import pallas as pl
from jax.experimental.pallas import tpu as pltpu


def _round_up(x, m):
    return (x + m - 1) // m * m


def _m_tiling(M):
    """Row tiling for the fused kernel.

    Small (or non-multiple-of-8) batches: one full-extent tile, grid=(1,), no
    padding.  Large batches (M >= 256, multiple of 8): 128-row tiles so the
    'parallel' grid axis has >= 2 steps (v7x megacore sharding) and the v5e
    4x128 MXU height is filled."""
    if M < 256 or M % 8 != 0:
        return M, M
    tm = 128
    return _round_up(M, tm), tm


# ---------------------------------------------------------------------------
# Fused Pallas kernel: whole VAE_MLP forward for one row-tile of the batch.
# ---------------------------------------------------------------------------
def _vae_fused_kernel(x_ref,
                      w1_ref, b1_ref, w2_ref, b2_ref,
                      wmu_ref, bmu_ref, wlv_ref, blv_ref,
                      w4_ref, b4_ref, w5_ref, b5_ref, w6_ref, b6_ref,
                      eps_ref,
                      out_ref, mu_ref, lv_ref, s_ref):
    # ---- encoder ----
    x = x_ref[...].astype(jnp.bfloat16)                      # cast on VPU (free)
    h = jnp.dot(x, w1_ref[...], preferred_element_type=jnp.float32) + b1_ref[...]
    h = jnp.maximum(h, 0.0)                                   # relu (f32)
    h = jnp.dot(h.astype(jnp.bfloat16), w2_ref[...],
                preferred_element_type=jnp.float32) + b2_ref[...]
    h = jnp.maximum(h, 0.0)
    hb = h.astype(jnp.bfloat16)

    # ---- heads + reparameterization (stay in vregs) ----
    mu = jnp.dot(hb, wmu_ref[...], preferred_element_type=jnp.float32) + bmu_ref[...]
    lv = jnp.dot(hb, wlv_ref[...], preferred_element_type=jnp.float32) + blv_ref[...]
    sample = mu + eps_ref[...] * jnp.exp(0.5 * lv)            # std = exp(0.5*log_var)

    # ---- decoder ----
    z = jnp.dot(sample.astype(jnp.bfloat16), w4_ref[...],
                preferred_element_type=jnp.float32) + b4_ref[...]
    z = jnp.maximum(z, 0.0)
    z = jnp.dot(z.astype(jnp.bfloat16), w5_ref[...],
                preferred_element_type=jnp.float32) + b5_ref[...]
    z = jnp.maximum(z, 0.0)
    y = jnp.dot(z.astype(jnp.bfloat16), w6_ref[...],
                preferred_element_type=jnp.float32) + b6_ref[...]
    y = jax.nn.sigmoid(y)

    # ---- single writeback of each output ----
    out_ref[...] = y.astype(out_ref.dtype)
    mu_ref[...] = mu
    lv_ref[...] = lv
    s_ref[...] = sample


# ---------------------------------------------------------------------------
# Parameters (PyTorch-default-style uniform init; weights stored bf16)
# ---------------------------------------------------------------------------
def init_params(key, x_dim, h_dim1, h_dim2, z_dim):
    def lin(k, fan_in, fan_out):
        k1, k2 = jax.random.split(k)
        bound = 1.0 / (fan_in ** 0.5)
        w = jax.random.uniform(k1, (fan_in, fan_out), jnp.float32, -bound, bound)
        b = jax.random.uniform(k2, (1, fan_out), jnp.float32, -bound, bound)
        # bf16 weights halve the (dominant) weight DMA; accumulation stays f32.
        return w.astype(jnp.bfloat16), b

    ks = jax.random.split(key, 7)
    return {
        "fc1": lin(ks[0], x_dim, h_dim1),
        "fc2": lin(ks[1], h_dim1, h_dim2),
        "fc_mu": lin(ks[2], h_dim2, z_dim),
        "fc_log_var": lin(ks[3], h_dim2, z_dim),
        "fc4": lin(ks[4], z_dim, h_dim2),
        "fc5": lin(ks[5], h_dim2, h_dim1),
        "fc6": lin(ks[6], h_dim1, x_dim),
    }


# ---------------------------------------------------------------------------
# VAE_MLP forward: one fused pallas_call
# ---------------------------------------------------------------------------
def vae_mlp_forward(params, x, eps):
    w1, b1 = params["fc1"]
    w2, b2 = params["fc2"]
    wmu, bmu = params["fc_mu"]
    wlv, blv = params["fc_log_var"]
    w4, b4 = params["fc4"]
    w5, b5 = params["fc5"]
    w6, b6 = params["fc6"]

    x_dim = w1.shape[0]
    z_dim = wmu.shape[1]
    x_flat = x.reshape(-1, x_dim)                              # x.view(-1, x_dim)
    M = x_flat.shape[0]

    M_pad, tm = _m_tiling(M)
    if M_pad != M:
        # Only hit for large, non-tile-multiple batches; padded rows are
        # independent garbage and are sliced off below.
        x_flat = jnp.pad(x_flat, ((0, M_pad - M), (0, 0)))
        eps = jnp.pad(eps, ((0, M_pad - M), (0, 0)))

    def full(arr):                                             # weight/bias: resident in VMEM
        return pl.BlockSpec(arr.shape, lambda i: (0, 0))

    row_x = pl.BlockSpec((tm, x_dim), lambda i: (i, 0))
    row_z = pl.BlockSpec((tm, z_dim), lambda i: (i, 0))

    outputs, mu, log_var, sample = pl.pallas_call(
        _vae_fused_kernel,
        out_shape=(
            jax.ShapeDtypeStruct((M_pad, x_dim), jnp.float32),
            jax.ShapeDtypeStruct((M_pad, z_dim), jnp.float32),
            jax.ShapeDtypeStruct((M_pad, z_dim), jnp.float32),
            jax.ShapeDtypeStruct((M_pad, z_dim), jnp.float32),
        ),
        grid=(M_pad // tm,),
        in_specs=[
            row_x,                                   # x
            full(w1), full(b1),
            full(w2), full(b2),
            full(wmu), full(bmu),
            full(wlv), full(blv),
            full(w4), full(b4),
            full(w5), full(b5),
            full(w6), full(b6),
            row_z,                                   # eps
        ],
        out_specs=(row_x, row_z, row_z, row_z),
        compiler_params=pltpu.CompilerParams(
            dimension_semantics=("parallel",),
        ),
    )(x_flat, w1, b1, w2, b2, wmu, bmu, wlv, blv, w4, b4, w5, b5, w6, b6, eps)

    if M_pad != M:
        outputs, mu, log_var, sample = (outputs[:M], mu[:M], log_var[:M], sample[:M])
    return outputs, mu, log_var, sample


if __name__ == "__main__":
    X_DIM, H1, H2, Z = 784, 256, 128, 32   # MNIST-like MLP VAE
    B = 8                                   # multiple of 8 -> no M padding

    key = jax.random.PRNGKey(0)
    kp, kx, ke = jax.random.split(key, 3)
    params = init_params(kp, X_DIM, H1, H2, Z)
    x = jax.random.normal(kx, (B, 1, 28, 28), jnp.float32)   # forward views to (B, 784)
    # Reparameterization noise (torch draws randn_like inside forward; supplied
    # externally here for determinism, consumed inside the fused kernel).
    eps = jax.random.normal(ke, (B, Z), jnp.float32)

    fwd = jax.jit(vae_mlp_forward)
    outputs, mu, log_var, sample = fwd(params, x, eps)
    jax.block_until_ready((outputs, mu, log_var, sample))

    assert outputs.shape == (B, X_DIM)
    assert mu.shape == (B, Z)
    assert log_var.shape == (B, Z)
    assert sample.shape == (B, Z)
    assert bool(jnp.all(jnp.isfinite(outputs)))
    assert bool(jnp.all((outputs >= 0.0) & (outputs <= 1.0)))
    print("KERNEL_OK")
</pallas_src>

<mosaic_0001>
module attributes {stable_mosaic.version = 11 : i64} {
  func.func @_vae_fused_kernel(%arg0: i32, %arg1: memref<8x784xf32, #tpu.memory_space<vmem>>, %arg2: memref<784x256xbf16, #tpu.memory_space<vmem>>, %arg3: memref<1x256xf32, #tpu.memory_space<vmem>>, %arg4: memref<256x128xbf16, #tpu.memory_space<vmem>>, %arg5: memref<1x128xf32, #tpu.memory_space<vmem>>, %arg6: memref<128x32xbf16, #tpu.memory_space<vmem>>, %arg7: memref<1x32xf32, #tpu.memory_space<vmem>>, %arg8: memref<128x32xbf16, #tpu.memory_space<vmem>>, %arg9: memref<1x32xf32, #tpu.memory_space<vmem>>, %arg10: memref<32x128xbf16, #tpu.memory_space<vmem>>, %arg11: memref<1x128xf32, #tpu.memory_space<vmem>>, %arg12: memref<128x256xbf16, #tpu.memory_space<vmem>>, %arg13: memref<1x256xf32, #tpu.memory_space<vmem>>, %arg14: memref<256x784xbf16, #tpu.memory_space<vmem>>, %arg15: memref<1x784xf32, #tpu.memory_space<vmem>>, %arg16: memref<8x32xf32, #tpu.memory_space<vmem>>, %arg17: memref<8x784xf32, #tpu.memory_space<vmem>>, %arg18: memref<8x32xf32, #tpu.memory_space<vmem>>, %arg19: memref<8x32xf32, #tpu.memory_space<vmem>>, %arg20: memref<8x32xf32, #tpu.memory_space<vmem>>) attributes {dimension_semantics = [#tpu.dimension_semantics<parallel>], iteration_bounds = array<i64: 1>, scalar_prefetch = 0 : i64, scratch_operands = 0 : i64, tpu.core_type = #tpu.core_type<tc>, window_params = [{transform_indices = @transform_0, window_bounds = array<i64: 8, 784>}, {pipeline_mode = #tpu.pipeline_mode<synchronous>, transform_indices = @transform_1, window_bounds = array<i64: 784, 256>}, {pipeline_mode = #tpu.pipeline_mode<synchronous>, transform_indices = @transform_2, window_bounds = array<i64: 1, 256>}, {pipeline_mode = #tpu.pipeline_mode<synchronous>, transform_indices = @transform_3, window_bounds = array<i64: 256, 128>}, {pipeline_mode = #tpu.pipeline_mode<synchronous>, transform_indices = @transform_4, window_bounds = array<i64: 1, 128>}, {pipeline_mode = #tpu.pipeline_mode<synchronous>, transform_indices = @transform_5, window_bounds = array<i64: 128, 32>}, {pipeline_mode = #tpu.pipeline_mode<synchronous>, transform_indices = @transform_6, window_bounds = array<i64: 1, 32>}, {pipeline_mode = #tpu.pipeline_mode<synchronous>, transform_indices = @transform_7, window_bounds = array<i64: 128, 32>}, {pipeline_mode = #tpu.pipeline_mode<synchronous>, transform_indices = @transform_8, window_bounds = array<i64: 1, 32>}, {pipeline_mode = #tpu.pipeline_mode<synchronous>, transform_indices = @transform_9, window_bounds = array<i64: 32, 128>}, {pipeline_mode = #tpu.pipeline_mode<synchronous>, transform_indices = @transform_10, window_bounds = array<i64: 1, 128>}, {pipeline_mode = #tpu.pipeline_mode<synchronous>, transform_indices = @transform_11, window_bounds = array<i64: 128, 256>}, {pipeline_mode = #tpu.pipeline_mode<synchronous>, transform_indices = @transform_12, window_bounds = array<i64: 1, 256>}, {pipeline_mode = #tpu.pipeline_mode<synchronous>, transform_indices = @transform_13, window_bounds = array<i64: 256, 784>}, {pipeline_mode = #tpu.pipeline_mode<synchronous>, transform_indices = @transform_14, window_bounds = array<i64: 1, 784>}, {transform_indices = @transform_15, window_bounds = array<i64: 8, 32>}, {transform_indices = @transform_16, window_bounds = array<i64: 8, 784>}, {transform_indices = @transform_17, window_bounds = array<i64: 8, 32>}, {transform_indices = @transform_18, window_bounds = array<i64: 8, 32>}, {transform_indices = @transform_19, window_bounds = array<i64: 8, 32>}]} {
    %c0 = arith.constant 0 : index
    %c0_0 = arith.constant 0 : index
    %0 = vector.load %arg1[%c0, %c0_0] : memref<8x784xf32, #tpu.memory_space<vmem>>, vector<8x784xf32>
    %1 = arith.truncf %0 : vector<8x784xf32> to vector<8x784xbf16>
    %c0_1 = arith.constant 0 : index
    %c0_2 = arith.constant 0 : index
    %2 = vector.load %arg2[%c0_1, %c0_2] : memref<784x256xbf16, #tpu.memory_space<vmem>>, vector<784x256xbf16>
    %cst = arith.constant dense<0.000000e+00> : vector<8x256xf32>
    %3 = tpu.matmul %1, %2, %cst {dimension_numbers = #tpu.dot_dimension_numbers<[1], [0], [0], [1], [0, 0, 1, 1], [], []>} : vector<8x784xbf16>, vector<784x256xbf16>, vector<8x256xf32> -> vector<8x256xf32>
    %c0_3 = arith.constant 0 : index
    %c0_4 = arith.constant 0 : index
    %4 = vector.load %arg3[%c0_3, %c0_4] : memref<1x256xf32, #tpu.memory_space<vmem>>, vector<1x256xf32>
    %5 = vector.broadcast %4 : vector<1x256xf32> to vector<8x256xf32>
    %6 = arith.addf %3, %5 : vector<8x256xf32>
    %cst_5 = arith.constant 0.000000e+00 : f32
    %7 = vector.broadcast %cst_5 : f32 to vector<8x256xf32>
    %8 = arith.maximumf %6, %7 : vector<8x256xf32>
    %9 = arith.truncf %8 : vector<8x256xf32> to vector<8x256xbf16>
    %c0_6 = arith.constant 0 : index
    %c0_7 = arith.constant 0 : index
    %10 = vector.load %arg4[%c0_6, %c0_7] : memref<256x128xbf16, #tpu.memory_space<vmem>>, vector<256x128xbf16>
    %cst_8 = arith.constant dense<0.000000e+00> : vector<8x128xf32>
    %11 = tpu.matmul %9, %10, %cst_8 {dimension_numbers = #tpu.dot_dimension_numbers<[1], [0], [0], [1], [0, 0, 1, 1], [], []>} : vector<8x256xbf16>, vector<256x128xbf16>, vector<8x128xf32> -> vector<8x128xf32>
    %c0_9 = arith.constant 0 : index
    %c0_10 = arith.constant 0 : index
    %12 = vector.load %arg5[%c0_9, %c0_10] : memref<1x128xf32, #tpu.memory_space<vmem>>, vector<1x128xf32>
    %13 = vector.broadcast %12 : vector<1x128xf32> to vector<8x128xf32>
    %14 = arith.addf %11, %13 : vector<8x128xf32>
    %cst_11 = arith.constant 0.000000e+00 : f32
    %15 = vector.broadcast %cst_11 : f32 to vector<8x128xf32>
    %16 = arith.maximumf %14, %15 : vector<8x128xf32>
    %17 = arith.truncf %16 : vector<8x128xf32> to vector<8x128xbf16>
    %c0_12 = arith.constant 0 : index
    %c0_13 = arith.constant 0 : index
    %18 = vector.load %arg6[%c0_12, %c0_13] : memref<128x32xbf16, #tpu.memory_space<vmem>>, vector<128x32xbf16>
    %cst_14 = arith.constant dense<0.000000e+00> : vector<8x32xf32>
    %19 = tpu.matmul %17, %18, %cst_14 {dimension_numbers = #tpu.dot_dimension_numbers<[1], [0], [0], [1], [0, 0, 1, 1], [], []>} : vector<8x128xbf16>, vector<128x32xbf16>, vector<8x32xf32> -> vector<8x32xf32>
    %c0_15 = arith.constant 0 : index
    %c0_16 = arith.constant 0 : index
    %20 = vector.load %arg7[%c0_15, %c0_16] : memref<1x32xf32, #tpu.memory_space<vmem>>, vector<1x32xf32>
    %21 = vector.broadcast %20 : vector<1x32xf32> to vector<8x32xf32>
    %22 = arith.addf %19, %21 : vector<8x32xf32>
    %c0_17 = arith.constant 0 : index
    %c0_18 = arith.constant 0 : index
    %23 = vector.load %arg8[%c0_17, %c0_18] : memref<128x32xbf16, #tpu.memory_space<vmem>>, vector<128x32xbf16>
    %cst_19 = arith.constant dense<0.000000e+00> : vector<8x32xf32>
    %24 = tpu.matmul %17, %23, %cst_19 {dimension_numbers = #tpu.dot_dimension_numbers<[1], [0], [0], [1], [0, 0, 1, 1], [], []>} : vector<8x128xbf16>, vector<128x32xbf16>, vector<8x32xf32> -> vector<8x32xf32>
    %c0_20 = arith.constant 0 : index
    %c0_21 = arith.constant 0 : index
    %25 = vector.load %arg9[%c0_20, %c0_21] : memref<1x32xf32, #tpu.memory_space<vmem>>, vector<1x32xf32>
    %26 = vector.broadcast %25 : vector<1x32xf32> to vector<8x32xf32>
    %27 = arith.addf %24, %26 : vector<8x32xf32>
    %c0_22 = arith.constant 0 : index
    %c0_23 = arith.constant 0 : index
    %28 = vector.load %arg16[%c0_22, %c0_23] : memref<8x32xf32, #tpu.memory_space<vmem>>, vector<8x32xf32>
    %cst_24 = arith.constant 5.000000e-01 : f32
    %29 = vector.broadcast %cst_24 : f32 to vector<8x32xf32>
    %30 = arith.mulf %29, %27 : vector<8x32xf32>
    %31 = math.exp %30 : vector<8x32xf32>
    %32 = arith.mulf %28, %31 : vector<8x32xf32>
    %33 = arith.addf %22, %32 : vector<8x32xf32>
    %34 = arith.truncf %33 : vector<8x32xf32> to vector<8x32xbf16>
    %c0_25 = arith.constant 0 : index
    %c0_26 = arith.constant 0 : index
    %35 = vector.load %arg10[%c0_25, %c0_26] : memref<32x128xbf16, #tpu.memory_space<vmem>>, vector<32x128xbf16>
    %cst_27 = arith.constant dense<0.000000e+00> : vector<8x128xf32>
    %36 = tpu.matmul %34, %35, %cst_27 {dimension_numbers = #tpu.dot_dimension_numbers<[1], [0], [0], [1], [0, 0, 1, 1], [], []>} : vector<8x32xbf16>, vector<32x128xbf16>, vector<8x128xf32> -> vector<8x128xf32>
    %c0_28 = arith.constant 0 : index
    %c0_29 = arith.constant 0 : index
    %37 = vector.load %arg11[%c0_28, %c0_29] : memref<1x128xf32, #tpu.memory_space<vmem>>, vector<1x128xf32>
    %38 = vector.broadcast %37 : vector<1x128xf32> to vector<8x128xf32>
    %39 = arith.addf %36, %38 : vector<8x128xf32>
    %cst_30 = arith.constant 0.000000e+00 : f32
    %40 = vector.broadcast %cst_30 : f32 to vector<8x128xf32>
    %41 = arith.maximumf %39, %40 : vector<8x128xf32>
    %42 = arith.truncf %41 : vector<8x128xf32> to vector<8x128xbf16>
    %c0_31 = arith.constant 0 : index
    %c0_32 = arith.constant 0 : index
    %43 = vector.load %arg12[%c0_31, %c0_32] : memref<128x256xbf16, #tpu.memory_space<vmem>>, vector<128x256xbf16>
    %cst_33 = arith.constant dense<0.000000e+00> : vector<8x256xf32>
    %44 = tpu.matmul %42, %43, %cst_33 {dimension_numbers = #tpu.dot_dimension_numbers<[1], [0], [0], [1], [0, 0, 1, 1], [], []>} : vector<8x128xbf16>, vector<128x256xbf16>, vector<8x256xf32> -> vector<8x256xf32>
    %c0_34 = arith.constant 0 : index
    %c0_35 = arith.constant 0 : index
    %45 = vector.load %arg13[%c0_34, %c0_35] : memref<1x256xf32, #tpu.memory_space<vmem>>, vector<1x256xf32>
    %46 = vector.broadcast %45 : vector<1x256xf32> to vector<8x256xf32>
    %47 = arith.addf %44, %46 : vector<8x256xf32>
    %cst_36 = arith.constant 0.000000e+00 : f32
    %48 = vector.broadcast %cst_36 : f32 to vector<8x256xf32>
    %49 = arith.maximumf %47, %48 : vector<8x256xf32>
    %50 = arith.truncf %49 : vector<8x256xf32> to vector<8x256xbf16>
    %c0_37 = arith.constant 0 : index
    %c0_38 = arith.constant 0 : index
    %51 = vector.load %arg14[%c0_37, %c0_38] : memref<256x784xbf16, #tpu.memory_space<vmem>>, vector<256x784xbf16>
    %cst_39 = arith.constant dense<0.000000e+00> : vector<8x784xf32>
    %52 = tpu.matmul %50, %51, %cst_39 {dimension_numbers = #tpu.dot_dimension_numbers<[1], [0], [0], [1], [0, 0, 1, 1], [], []>} : vector<8x256xbf16>, vector<256x784xbf16>, vector<8x784xf32> -> vector<8x784xf32>
    %c0_40 = arith.constant 0 : index
    %c0_41 = arith.constant 0 : index
    %53 = vector.load %arg15[%c0_40, %c0_41] : memref<1x784xf32, #tpu.memory_space<vmem>>, vector<1x784xf32>
    %54 = vector.broadcast %53 : vector<1x784xf32> to vector<8x784xf32>
    %55 = arith.addf %52, %54 : vector<8x784xf32>
    %56 = arith.negf %55 : vector<8x784xf32>
    %57 = math.exp %56 : vector<8x784xf32>
    %cst_42 = arith.constant 1.000000e+00 : f32
    %58 = vector.broadcast %cst_42 : f32 to vector<8x784xf32>
    %59 = arith.addf %58, %57 : vector<8x784xf32>
    %60 = arith.divf %58, %59 : vector<8x784xf32>
    %c0_43 = arith.constant 0 : index
    %c0_44 = arith.constant 0 : index
    %61 = vector.load %arg17[%c0_43, %c0_44] : memref<8x784xf32, #tpu.memory_space<vmem>>, vector<8x784xf32>
    tpu.vector_store %arg17[%c0_43, %c0_44], %60 {strides = array<i32>} : memref<8x784xf32, #tpu.memory_space<vmem>>, vector<8x784xf32>,
    %c0_45 = arith.constant 0 : index
    %c0_46 = arith.constant 0 : index
    %62 = vector.load %arg18[%c0_45, %c0_46] : memref<8x32xf32, #tpu.memory_space<vmem>>, vector<8x32xf32>
    tpu.vector_store %arg18[%c0_45, %c0_46], %22 {strides = array<i32>} : memref<8x32xf32, #tpu.memory_space<vmem>>, vector<8x32xf32>,
    %c0_47 = arith.constant 0 : index
    %c0_48 = arith.constant 0 : index
    %63 = vector.load %arg19[%c0_47, %c0_48] : memref<8x32xf32, #tpu.memory_space<vmem>>, vector<8x32xf32>
    tpu.vector_store %arg19[%c0_47, %c0_48], %27 {strides = array<i32>} : memref<8x32xf32, #tpu.memory_space<vmem>>, vector<8x32xf32>,
    %c0_49 = arith.constant 0 : index
    %c0_50 = arith.constant 0 : index
    %64 = vector.load %arg20[%c0_49, %c0_50] : memref<8x32xf32, #tpu.memory_space<vmem>>, vector<8x32xf32>
    tpu.vector_store %arg20[%c0_49, %c0_50], %33 {strides = array<i32>} : memref<8x32xf32, #tpu.memory_space<vmem>>, vector<8x32xf32>,
    return
  }
  func.func @transform_0(%arg0: i32) -> (i32, i32) {
    %c0_i32 = arith.constant 0 : i32
    %c0_i32_0 = arith.constant 0 : i32
    return %arg0, %c0_i32 : i32, i32
  }
  func.func @transform_1(%arg0: i32) -> (i32, i32) {
    %c0_i32 = arith.constant 0 : i32
    %c0_i32_0 = arith.constant 0 : i32
    %c0_i32_1 = arith.constant 0 : i32
    return %c0_i32, %c0_i32_0 : i32, i32
  }
  func.func @transform_2(%arg0: i32) -> (i32, i32) {
    %c0_i32 = arith.constant 0 : i32
    %c0_i32_0 = arith.constant 0 : i32
    %c0_i32_1 = arith.constant 0 : i32
    return %c0_i32, %c0_i32_0 : i32, i32
  }
  func.func @transform_3(%arg0: i32) -> (i32, i32) {
    %c0_i32 = arith.constant 0 : i32
    %c0_i32_0 = arith.constant 0 : i32
    %c0_i32_1 = arith.constant 0 : i32
    return %c0_i32, %c0_i32_0 : i32, i32
  }
  func.func @transform_4(%arg0: i32) -> (i32, i32) {
    %c0_i32 = arith.constant 0 : i32
    %c0_i32_0 = arith.constant 0 : i32
    %c0_i32_1 = arith.constant 0 : i32
    return %c0_i32, %c0_i32_0 : i32, i32
  }
  func.func @transform_5(%arg0: i32) -> (i32, i32) {
    %c0_i32 = arith.constant 0 : i32
    %c0_i32_0 = arith.constant 0 : i32
    %c0_i32_1 = arith.constant 0 : i32
    return %c0_i32, %c0_i32_0 : i32, i32
  }
  func.func @transform_6(%arg0: i32) -> (i32, i32) {
    %c0_i32 = arith.constant 0 : i32
    %c0_i32_0 = arith.constant 0 : i32
    %c0_i32_1 = arith.constant 0 : i32
    return %c0_i32, %c0_i32_0 : i32, i32
  }
  func.func @transform_7(%arg0: i32) -> (i32, i32) {
    %c0_i32 = arith.constant 0 : i32
    %c0_i32_0 = arith.constant 0 : i32
    %c0_i32_1 = arith.constant 0 : i32
    return %c0_i32, %c0_i32_0 : i32, i32
  }
  func.func @transform_8(%arg0: i32) -> (i32, i32) {
    %c0_i32 = arith.constant 0 : i32
    %c0_i32_0 = arith.constant 0 : i32
    %c0_i32_1 = arith.constant 0 : i32
    return %c0_i32, %c0_i32_0 : i32, i32
  }
  func.func @transform_9(%arg0: i32) -> (i32, i32) {
    %c0_i32 = arith.constant 0 : i32
    %c0_i32_0 = arith.constant 0 : i32
    %c0_i32_1 = arith.constant 0 : i32
    return %c0_i32, %c0_i32_0 : i32, i32
  }
  func.func @transform_10(%arg0: i32) -> (i32, i32) {
    %c0_i32 = arith.constant 0 : i32
    %c0_i32_0 = arith.constant 0 : i32
    %c0_i32_1 = arith.constant 0 : i32
    return %c0_i32, %c0_i32_0 : i32, i32
  }
  func.func @transform_11(%arg0: i32) -> (i32, i32) {
    %c0_i32 = arith.constant 0 : i32
    %c0_i32_0 = arith.constant 0 : i32
    %c0_i32_1 = arith.constant 0 : i32
    return %c0_i32, %c0_i32_0 : i32, i32
  }
  func.func @transform_12(%arg0: i32) -> (i32, i32) {
    %c0_i32 = arith.constant 0 : i32
    %c0_i32_0 = arith.constant 0 : i32
    %c0_i32_1 = arith.constant 0 : i32
    return %c0_i32, %c0_i32_0 : i32, i32
  }
  func.func @transform_13(%arg0: i32) -> (i32, i32) {
    %c0_i32 = arith.constant 0 : i32
    %c0_i32_0 = arith.constant 0 : i32
    %c0_i32_1 = arith.constant 0 : i32
    return %c0_i32, %c0_i32_0 : i32, i32
  }
  func.func @transform_14(%arg0: i32) -> (i32, i32) {
    %c0_i32 = arith.constant 0 : i32
    %c0_i32_0 = arith.constant 0 : i32
    %c0_i32_1 = arith.constant 0 : i32
    return %c0_i32, %c0_i32_0 : i32, i32
  }
  func.func @transform_15(%arg0: i32) -> (i32, i32) {
    %c0_i32 = arith.constant 0 : i32
    %c0_i32_0 = arith.constant 0 : i32
    return %arg0, %c0_i32 : i32, i32
  }
  func.func @transform_16(%arg0: i32) -> (i32, i32) {
    %c0_i32 = arith.constant 0 : i32
    %c0_i32_0 = arith.constant 0 : i32
    return %arg0, %c0_i32 : i32, i32
  }
  func.func @transform_17(%arg0: i32) -> (i32, i32) {
    %c0_i32 = arith.constant 0 : i32
    %c0_i32_0 = arith.constant 0 : i32
    return %arg0, %c0_i32 : i32, i32
  }
  func.func @transform_18(%arg0: i32) -> (i32, i32) {
    %c0_i32 = arith.constant 0 : i32
    %c0_i32_0 = arith.constant 0 : i32
    return %arg0, %c0_i32 : i32, i32
  }
  func.func @transform_19(%arg0: i32) -> (i32, i32) {
    %c0_i32 = arith.constant 0 : i32
    %c0_i32_0 = arith.constant 0 : i32
    return %arg0, %c0_i32 : i32, i32
  }
}

</mosaic_0001>

<bundles_post_ra>
// kernel: vae_mlp_forward.1
= control target key start
LH: loop header
LB: loop body
LE: loop exit
PB: predicated region body
PF: predicated region fallthrough
CT: control target
= control target key end

     0   :  { %s4417_s0 = inlined_call_operand.vmem [shape: f32[8,784], index: 0, kind: input, shape index: {}]   ;;  %s4418_s1 = inlined_call_operand.vmem [shape: bf16[784,256], index: 1, kind: input, shape index: {}]   ;;  %s4419_s2 = inlined_call_operand.vmem [shape: f32[1,256], index: 2, kind: input, shape index: {}]   ;;  %s4420_s3 = inlined_call_operand.vmem [shape: bf16[256,128], index: 3, kind: input, shape index: {}]   ;;  %s4421_s4 = inlined_call_operand.vmem [shape: f32[1,128], index: 4, kind: input, shape index: {}]   ;;  %s4422_s5 = inlined_call_operand.vmem [shape: bf16[128,32], index: 5, kind: input, shape index: {}]   ;;  %s4423_s6 = inlined_call_operand.vmem [shape: f32[1,32], index: 6, kind: input, shape index: {}]   ;;  %s4424_s7 = inlined_call_operand.vmem [shape: bf16[128,32], index: 7, kind: input, shape index: {}]   ;;  %s4425_s8 = inlined_call_operand.vmem [shape: f32[1,32], index: 8, kind: input, shape index: {}]   ;;  %s4426_s9 = inlined_call_operand.vmem [shape: bf16[32,128], index: 9, kind: input, shape index: {}]   ;;  %s4427_s10 = inlined_call_operand.vmem [shape: f32[1,128], index: 10, kind: input, shape index: {}]   ;;  %s4428_s11 = inlined_call_operand.vmem [shape: bf16[128,256], index: 11, kind: input, shape index: {}]   ;;  %s4429_s12 = inlined_call_operand.vmem [shape: f32[1,256], index: 12, kind: input, shape index: {}]   ;;  %s4430_s13 = inlined_call_operand.vmem [shape: bf16[256,784], index: 13, kind: input, shape index: {}]   ;;  %s4431_s14 = inlined_call_operand.vmem [shape: f32[1,784], index: 14, kind: input, shape index: {}]   ;;  %s4432_s15 = inlined_call_operand.vmem [shape: f32[8,32], index: 15, kind: input, shape index: {}]   ;;  %s4433_s16 = inlined_call_operand.hbm [shape: f32[8,784], index: 16, kind: output, shape index: {0}]   ;;  %s4434_s17 = inlined_call_operand.hbm [shape: f32[8,32], index: 17, kind: output, shape index: {1}]   ;;  %s4435_s18 = inlined_call_operand.hbm [shape: f32[8,32], index: 18, kind: output, shape index: {2}]   ;;  %s4436_s19 = inlined_call_operand.hbm [shape: f32[8,32], index: 19, kind: output, shape index: {3}]  }
   0x1   :  { %4440 = sst [smem:[#allocation12_spill]] %s4417_s0 }
   0x2   :  { %4441 = sst [smem:[#allocation13_spill]] %s4418_s1 }
   0x3   :  { %4442 = sst [smem:[#allocation14_spill]] %s4419_s2 }
   0x4   :  { %4443 = sst [smem:[#allocation15_spill]] %s4420_s3 }
   0x5   :  { %25 = vsyncpa [#allocation3], 0 }
   0x6   :  { %26 = vsyncpa [#allocation5], 0  ;;  %s4444_s20 = sld [smem:[#allocation13_spill]]  ;;  %s4445_s0 = sld [smem:[#allocation12_spill]]  ;;  %v3380_v42 = vmov 0   ;;  %vm675_vm0 = vcmask 130048  }
   0x7   :  { %834 = vmatprep.mubr.bf16.mxu1 %v3380_v42  ;;  %s4446_s3 = sld [smem:[#allocation15_spill]] }
   0xc   :  { %v2891_v0 = vld [vmem:[%s4444_s20 + $0x4] ss:$8 sps:$4 sm:$0xff]   ;;  %v2893_v1 = vld [vmem:[%s4444_s20] ss:$8 sps:$4 sm:$0xff]   ;;  %v2894_v2 = vld [vmem:[%s4444_s20 + $0x14] ss:$8 sps:$4 sm:$0xff]  }
   0xd   :  { %679 = vmatprep.subr.bf16.mxu0 %v2891_v0  ;;  %v2896_v3 = vld [vmem:[%s4444_s20 + $0x10] ss:$8 sps:$4 sm:$0xff]   ;;  %v2897_v4 = vld [vmem:[%s4444_s20 + $0x24] ss:$8 sps:$4 sm:$0xff]   ;;  %v2899_v5 = vld [vmem:[%s4444_s20 + $0x20] ss:$8 sps:$4 sm:$0xff]  }
   0xe   :  { %680 = vmatpush1.bf16.msra.mxu0 %v2893_v1  ;;  %v2900_v6 = vld [vmem:[%s4444_s20 + $0x34] ss:$8 sps:$4 sm:$0xff]   ;;  %v2902_v7 = vld [vmem:[%s4444_s20 + $0x30] ss:$8 sps:$4 sm:$0xff]   ;;  %v2903_v8 = vld [vmem:[%s4444_s20 + $0x44] ss:$8 sps:$4 sm:$0xff]  }
   0xf   :  { %681 = vmatprep.subr.bf16.mxu0 %v2894_v2  ;;  %v2905_v9 = vld [vmem:[%s4444_s20 + $0x40] ss:$8 sps:$4 sm:$0xff]   ;;  %v2906_v10 = vld [vmem:[%s4444_s20 + $0x54] ss:$8 sps:$4 sm:$0xff]   ;;  %v2908_v11 = vld [vmem:[%s4444_s20 + $0x50] ss:$8 sps:$4 sm:$0xff]  }
  0x10   :  { %v2909_v12 = vld [vmem:[%s4444_s20 + $0x64] ss:$8 sps:$4 sm:$0xff]   ;;  %v2911_v15 = vld [vmem:[%s4444_s20 + $0x60] ss:$8 sps:$4 sm:$0xff]   ;;  %v2912_v16 = vld [vmem:[%s4444_s20 + $0x74] ss:$8 sps:$4 sm:$0xff]  }
  0x11   :  { %v62_v13 = vld [vmem:[%s4445_s0 + $0x8] sm:$0xff]  ;;  %v2914_v17 = vld [vmem:[%s4444_s20 + $0x70] ss:$8 sps:$4 sm:$0xff]   ;;  %v2918_v20 = vld [vmem:[%s4444_s20 + $0x94] ss:$8 sps:$4 sm:$0xff]  }
  0x12   :  { %682 = vmatpush1.bf16.msra.mxu0 %v2896_v3  ;;  %v69_v14 = vpack.c.bf16 %v62_v13, %v62_v13  ;;  %v2915_v18 = vld [vmem:[%s4444_s20 + $0x84] ss:$8 sps:$4 sm:$0xff]   ;;  %v2917_v19 = vld [vmem:[%s4444_s20 + $0x80] ss:$8 sps:$4 sm:$0xff]   ;;  %v2920_v21 = vld [vmem:[%s4444_s20 + $0x90] ss:$8 sps:$4 sm:$0xff]  }
  0x13   :  { %683 = vmatprep.subr.bf16.mxu0 %v2897_v4  ;;  %v2921_v22 = vld [vmem:[%s4444_s20 + $0xa4] ss:$8 sps:$4 sm:$0xff]   ;;  %v2923_v23 = vld [vmem:[%s4444_s20 + $0xa0] ss:$8 sps:$4 sm:$0xff]   ;;  %v2924_v24 = vld [vmem:[%s4444_s20 + $0xb4] ss:$8 sps:$4 sm:$0xff]  }
  0x14   :  { %711 = vmatprep.mubr.bf16.mxu0 %v69_v14  ;;  %v2926_v25 = vld [vmem:[%s4444_s20 + $0xb0] ss:$8 sps:$4 sm:$0xff]   ;;  %v2927_v26 = vld [vmem:[%s4444_s20 + $0xc4] ss:$8 sps:$4 sm:$0xff]   ;;  %v2929_v27 = vld [vmem:[%s4444_s20 + $0xc0] ss:$8 sps:$4 sm:$0xff]  }
  0x15   :  { %v2930_v28 = vld [vmem:[%s4444_s20 + $0xd4] ss:$8 sps:$4 sm:$0xff]   ;;  %v2932_v29 = vld [vmem:[%s4444_s20 + $0xd0] ss:$8 sps:$4 sm:$0xff]   ;;  %v2933_v30 = vld [vmem:[%s4444_s20 + $0xe4] ss:$8 sps:$4 sm:$0xff]  }
  0x16   :  { %684 = vmatpush1.bf16.msra.mxu0 %v2899_v5  ;;  %v2935_v31 = vld [vmem:[%s4444_s20 + $0xe0] ss:$8 sps:$4 sm:$0xff]   ;;  %v2936_v32 = vld [vmem:[%s4444_s20 + $0xf4] ss:$8 sps:$4 sm:$0xff]   ;;  %v2938_v33 = vld [vmem:[%s4444_s20 + $0xf0] ss:$8 sps:$4 sm:$0xff]  }
  0x17   :  { %685 = vmatprep.subr.bf16.mxu0 %v2900_v6  ;;  %v2941_v34 = vld [vmem:[%s4444_s20 + $0x104] ss:$8 sps:$4 sm:$0xff]   ;;  %v64_v36 = vld [vmem:[%s4445_s0 + $0x18] sm:$0xff]  ;;  %v2939_v38 = vld [vmem:[%s4444_s20 + $0x100] ss:$8 sps:$4 sm:$0xff]  }
  0x18   :  { %v61_v35 = vld [vmem:[%s4445_s0] sm:$0xff]  ;;  %v2944_v39 = vld [vmem:[%s4444_s20 + $0x114] ss:$8 sps:$4 sm:$0xff]   ;;  %v71_v40 = vpack.c.bf16 %v64_v36, %v64_v36  ;;  %v2942_v43 = vld [vmem:[%s4444_s20 + $0x110] ss:$8 sps:$4 sm:$0xff]  }
  0x19   :  { %v68_v37 = vpack.c.bf16 %v61_v35, %v61_v35  ;;  %v3032_v41 = vld [vmem:[%s4444_s20 + $0x304] ss:$8 sps:$4 sm:$0xff]   ;;  %v3037_v44 = vld [vmem:[%s4444_s20 + $0x300] ss:$8 sps:$4 sm:$0xff]   ;;  %v67_v46 = vld [vmem:[%s4445_s0 + $0x30] sm:$0xff] }
  0x1a   :  { %686 = vmatpush1.bf16.msra.mxu0 %v2902_v7  ;;  %802 = vmatprep.subr.bf16.mxu1 %v3032_v41  ;;  %v2947_v45 = vld [vmem:[%s4444_s20 + $0x124] ss:$8 sps:$4 sm:$0xff]   ;;  %v74_v47 = vpack.c.bf16 %v67_v46, %v67_v46  ;;  %v2945_v49 = vld [vmem:[%s4444_s20 + $0x120] ss:$8 sps:$4 sm:$0xff]   ;;  %v2950_v52 = vld [vmem:[%s4444_s20 + $0x134] ss:$8 sps:$4 sm:$0xff]  }
  0x1b   :  { %687 = vmatprep.subr.bf16.mxu0 %v2903_v8  ;;  %803 = vmatpush1.bf16.msra.mxu1 %v3037_v44  ;;  %v3038_v48 = vld [vmem:[%s4446_s3 + $0x40] sm:$0xff]   ;;  %v3040_v51 = vld [vmem:[%s4446_s3 + $0x48] sm:$0xff]   ;;  %v3042_v54 = vld [vmem:[%s4446_s3 + $0x50] sm:$0xff]  }
  0x1c   :  { %v3039_v50 = vld [vmem:[%s4446_s3] sm:$0xff]   ;;  %2759 = vmatprep.subr.bf16.mxu1 %v3038_v48  ;;  %v3041_v53 = vld [vmem:[%s4446_s3 + $0x8] sm:$0xff]   ;;  %v2948_v55 = vld [vmem:[%s4444_s20 + $0x130] ss:$8 sps:$4 sm:$0xff]  }
  0x1d   :  { %v2953_v56 = vld [vmem:[%s4444_s20 + $0x144] ss:$8 sps:$4 sm:$0xff]   ;;  %v3043_v57 = vld [vmem:[%s4446_s3 + $0x10] sm:$0xff]   ;;  %v2951_v58 = vld [vmem:[%s4444_s20 + $0x140] ss:$8 sps:$4 sm:$0xff]  }
  0x1e   :  { %688 = vmatpush1.bf16.msra.mxu0 %v2905_v9  ;;  %2584 = vmatmul.mubr.msk.bf16.vlgmr.msra.gmra.mrb[0].mxu1 %vm675_vm0, %v74_v47  ;;  %v3044_v59 = vld [vmem:[%s4446_s3 + $0x58] sm:$0xff]   ;;  %v3046_v62 = vld [vmem:[%s4446_s3 + $0x60] sm:$0xff]  }
  0x1f   :  { %689 = vmatprep.subr.bf16.mxu0 %v2906_v10  ;;  %2760 = vmatpush3.bf16.msra.mxu1 %v3039_v50  ;;  %v2956_v60 = vld [vmem:[%s4444_s20 + $0x154] ss:$8 sps:$4 sm:$0xff]   ;;  %v2954_v63 = vld [vmem:[%s4444_s20 + $0x150] ss:$8 sps:$4 sm:$0xff]   ;;  %v2959_v0 = vld [vmem:[%s4444_s20 + $0x164] ss:$8 sps:$4 sm:$0xff]  }
  0x20   :  { %2761 = vmatprep.subr.bf16.mxu1 %v3040_v51  ;;  %v3045_v61 = vld [vmem:[%s4446_s3 + $0x18] sm:$0xff]   ;;  %v3047_v1 = vld [vmem:[%s4446_s3 + $0x20] sm:$0xff]  }
  0x21   :  { %v2957_v2 = vld [vmem:[%s4444_s20 + $0x160] ss:$8 sps:$4 sm:$0xff]   ;;  %v2962_v3 = vld [vmem:[%s4444_s20 + $0x174] ss:$8 sps:$4 sm:$0xff]   ;;  %v2960_v4 = vld [vmem:[%s4444_s20 + $0x170] ss:$8 sps:$4 sm:$0xff]  }
  0x22   :  { %690 = vmatpush1.bf16.msra.mxu0 %v2908_v11  ;;  %v2965_v5 = vld [vmem:[%s4444_s20 + $0x184] ss:$8 sps:$4 sm:$0xff]   ;;  %v2963_v6 = vld [vmem:[%s4444_s20 + $0x180] ss:$8 sps:$4 sm:$0xff]   ;;  %v2968_v7 = vld [vmem:[%s4444_s20 + $0x194] ss:$8 sps:$4 sm:$0xff]  }
  0x23   :  { %691 = vmatprep.subr.bf16.mxu0 %v2909_v12  ;;  %2762 = vmatpush3.bf16.msra.mxu1 %v3041_v53  ;;  %v2966_v8 = vld [vmem:[%s4444_s20 + $0x190] ss:$8 sps:$4 sm:$0xff]   ;;  %v2971_v9 = vld [vmem:[%s4444_s20 + $0x1a4] ss:$8 sps:$4 sm:$0xff]   ;;  %v2969_v10 = vld [vmem:[%s4444_s20 + $0x1a0] ss:$8 sps:$4 sm:$0xff]  }
  0x24   :  { %2763 = vmatprep.subr.bf16.mxu1 %v3042_v54  ;;  %v2974_v11 = vld [vmem:[%s4444_s20 + $0x1b4] ss:$8 sps:$4 sm:$0xff]   ;;  %v2972_v12 = vld [vmem:[%s4444_s20 + $0x1b0] ss:$8 sps:$4 sm:$0xff]   ;;  %v2977_v13 = vld [vmem:[%s4444_s20 + $0x1c4] ss:$8 sps:$4 sm:$0xff]  }
  0x25   :  { %v2975_v14 = vld [vmem:[%s4444_s20 + $0x1c0] ss:$8 sps:$4 sm:$0xff]  }
  0x26   :  { %692 = vmatpush1.bf16.msra.mxu0 %v2911_v15  ;;  %v2980_v15 = vld [vmem:[%s4444_s20 + $0x1d4] ss:$8 sps:$4 sm:$0xff]  }
  0x27   :  { %693 = vmatprep.subr.bf16.mxu0 %v2912_v16  ;;  %2764 = vmatpush3.bf16.msra.mxu1 %v3043_v57  ;;  %v2978_v16 = vld [vmem:[%s4444_s20 + $0x1d0] ss:$8 sps:$4 sm:$0xff]  }
  0x28   :  { %2765 = vmatprep.subr.bf16.mxu1 %v3044_v59 }
  0x2a   :  { %694 = vmatpush1.bf16.msra.mxu0 %v2914_v17  ;;  %v2983_v17 = vld [vmem:[%s4444_s20 + $0x1e4] ss:$8 sps:$4 sm:$0xff]  }
  0x2b   :  { %695 = vmatprep.subr.bf16.mxu0 %v2915_v18  ;;  %2766 = vmatpush3.bf16.msra.mxu1 %v3045_v61  ;;  %v2981_v18 = vld [vmem:[%s4444_s20 + $0x1e0] ss:$8 sps:$4 sm:$0xff]  }
  0x2c   :  { %2767 = vmatprep.subr.bf16.mxu1 %v3046_v62 }
  0x2e   :  { %696 = vmatpush1.bf16.msra.mxu0 %v2917_v19  ;;  %v2986_v19 = vld [vmem:[%s4444_s20 + $0x1f4] ss:$8 sps:$4 sm:$0xff]  }
  0x2f   :  { %697 = vmatprep.subr.bf16.mxu0 %v2918_v20  ;;  %2768 = vmatpush3.bf16.msra.mxu1 %v3047_v1  ;;  %v2984_v20 = vld [vmem:[%s4444_s20 + $0x1f0] ss:$8 sps:$4 sm:$0xff]  }
  0x32   :  { %698 = vmatpush1.bf16.msra.mxu0 %v2920_v21  ;;  %v63_v21 = vld [vmem:[%s4445_s0 + $0x10] sm:$0xff] }
  0x33   :  { %699 = vmatprep.subr.bf16.mxu0 %v2921_v22  ;;  %v2989_v22 = vld [vmem:[%s4444_s20 + $0x204] ss:$8 sps:$4 sm:$0xff]  }
  0x36   :  { %700 = vmatpush1.bf16.msra.mxu0 %v2923_v23  ;;  %v66_v23 = vld [vmem:[%s4445_s0 + $0x28] sm:$0xff] }
  0x37   :  { %701 = vmatprep.subr.bf16.mxu0 %v2924_v24  ;;  %v2987_v24 = vld [vmem:[%s4444_s20 + $0x200] ss:$8 sps:$4 sm:$0xff]  }
  0x3a   :  { %702 = vmatpush1.bf16.msra.mxu0 %v2926_v25  ;;  %v70_v25 = vpack.c.bf16 %v63_v21, %v63_v21 }
  0x3b   :  { %703 = vmatprep.subr.bf16.mxu0 %v2927_v26  ;;  %v2992_v26 = vld [vmem:[%s4444_s20 + $0x214] ss:$8 sps:$4 sm:$0xff]  }
  0x3e   :  { %704 = vmatpush1.bf16.msra.mxu0 %v2929_v27  ;;  %v73_v27 = vpack.c.bf16 %v66_v23, %v66_v23 }
  0x3f   :  { %705 = vmatprep.subr.bf16.mxu0 %v2930_v28  ;;  %v2990_v28 = vld [vmem:[%s4444_s20 + $0x210] ss:$8 sps:$4 sm:$0xff]  }
  0x42   :  { %706 = vmatpush1.bf16.msra.mxu0 %v2932_v29  ;;  %v2995_v29 = vld [vmem:[%s4444_s20 + $0x224] ss:$8 sps:$4 sm:$0xff]  }
  0x43   :  { %707 = vmatprep.subr.bf16.mxu0 %v2933_v30  ;;  %v2993_v30 = vld [vmem:[%s4444_s20 + $0x220] ss:$8 sps:$4 sm:$0xff]  }
  0x46   :  { %708 = vmatpush1.bf16.msra.mxu0 %v2935_v31  ;;  %v2998_v31 = vld [vmem:[%s4444_s20 + $0x234] ss:$8 sps:$4 sm:$0xff]  }
  0x47   :  { %709 = vmatprep.subr.bf16.mxu0 %v2936_v32  ;;  %v2996_v32 = vld [vmem:[%s4444_s20 + $0x230] ss:$8 sps:$4 sm:$0xff]  }
  0x4a   :  { %710 = vmatpush1.bf16.msra.mxu0 %v2938_v33  ;;  %v3001_v33 = vld [vmem:[%s4444_s20 + $0x244] ss:$8 sps:$4 sm:$0xff]  }
  0x4b   :  { %720 = vmatprep.subr.bf16.mxu0 %v2941_v34 }
  0x4d   :  { %712 = vmatmul.mubr.bf16.vlgmr.msra.gmra.mrb[0].mxu0 %v68_v37 }
  0x4e   :  { %721 = vmatpush1.bf16.msra.mxu0 %v2939_v38  ;;  %752 = vmatprep.mubr.bf16.mxu0 %v71_v40 }
  0x4f   :  { %722 = vmatprep.subr.bf16.mxu0 %v2944_v39 }
  0x52   :  { %723 = vmatpush1.bf16.msra.mxu0 %v2942_v43 }
  0x53   :  { %724 = vmatprep.subr.bf16.mxu0 %v2947_v45 }
  0x56   :  { %725 = vmatpush1.bf16.msra.mxu0 %v2945_v49 }
  0x57   :  { %726 = vmatprep.subr.bf16.mxu0 %v2950_v52 }
  0x5a   :  { %727 = vmatpush1.bf16.msra.mxu0 %v2948_v55 }
  0x5b   :  { %728 = vmatprep.subr.bf16.mxu0 %v2953_v56 }
  0x5e   :  { %729 = vmatpush1.bf16.msra.mxu0 %v2951_v58 }
  0x5f   :  { %730 = vmatprep.subr.bf16.mxu0 %v2956_v60 }
  0x62   :  { %731 = vmatpush1.bf16.msra.mxu0 %v2954_v63 }
  0x63   :  { %732 = vmatprep.subr.bf16.mxu0 %v2959_v0 }
  0x66   :  { %733 = vmatpush1.bf16.msra.mxu0 %v2957_v2 }
  0x67   :  { %734 = vmatprep.subr.bf16.mxu0 %v2962_v3 }
  0x6a   :  { %735 = vmatpush1.bf16.msra.mxu0 %v2960_v4 }
  0x6b   :  { %736 = vmatprep.subr.bf16.mxu0 %v2965_v5 }
  0x6e   :  { %737 = vmatpush1.bf16.msra.mxu0 %v2963_v6 }
  0x6f   :  { %738 = vmatprep.subr.bf16.mxu0 %v2968_v7 }
  0x72   :  { %739 = vmatpush1.bf16.msra.mxu0 %v2966_v8 }
  0x73   :  { %740 = vmatprep.subr.bf16.mxu0 %v2971_v9 }
  0x76   :  { %741 = vmatpush1.bf16.msra.mxu0 %v2969_v10 }
  0x77   :  { %742 = vmatprep.subr.bf16.mxu0 %v2974_v11 }
  0x7a   :  { %743 = vmatpush1.bf16.msra.mxu0 %v2972_v12 }
  0x7b   :  { %744 = vmatprep.subr.bf16.mxu0 %v2977_v13 }
  0x7e   :  { %745 = vmatpush1.bf16.msra.mxu0 %v2975_v14 }
  0x7f   :  { %746 = vmatprep.subr.bf16.mxu0 %v2980_v15 }
  0x82   :  { %747 = vmatpush1.bf16.msra.mxu0 %v2978_v16 }
  0x83   :  { %748 = vmatprep.subr.bf16.mxu0 %v2983_v17 }
  0x86   :  { %749 = vmatpush1.bf16.msra.mxu0 %v2981_v18 }
  0x87   :  { %750 = vmatprep.subr.bf16.mxu0 %v2986_v19 }
  0x8a   :  { %751 = vmatpush1.bf16.msra.mxu0 %v2984_v20 }
  0x8b   :  { %761 = vmatprep.subr.bf16.mxu0 %v2989_v22 }
  0x8d   :  { %753 = vmatmul.mubr.bf16.vlgmr.msra.gmra.mrb[0].mxu0 %v70_v25 }
  0x8e   :  { %762 = vmatpush1.bf16.msra.mxu0 %v2987_v24  ;;  %793 = vmatprep.mubr.bf16.mxu0 %v73_v27 }
  0x8f   :  { %763 = vmatprep.subr.bf16.mxu0 %v2992_v26 }
  0x92   :  { %764 = vmatpush1.bf16.msra.mxu0 %v2990_v28 }
  0x93   :  { %765 = vmatprep.subr.bf16.mxu0 %v2995_v29 }
  0x96   :  { %766 = vmatpush1.bf16.msra.mxu0 %v2993_v30 }
  0x97   :  { %767 = vmatprep.subr.bf16.mxu0 %v2998_v31 }
  0x98   :  { %27 = vsyncpa [#allocation8], 0  ;;  %v2999_v34 = vld [vmem:[%s4444_s20 + $0x240] ss:$8 sps:$4 sm:$0xff]   ;;  %v3004_v35 = vld [vmem:[%s4444_s20 + $0x254] ss:$8 sps:$4 sm:$0xff]   ;;  %v175_v7 = vlaneseq }
  0x99   :  { %v3002_v36 = vld [vmem:[%s4444_s20 + $0x250] ss:$8 sps:$4 sm:$0xff]   ;;  %v3007_v37 = vld [vmem:[%s4444_s20 + $0x264] ss:$8 sps:$4 sm:$0xff]   ;;  %v3005_v38 = vld [vmem:[%s4444_s20 + $0x260] ss:$8 sps:$4 sm:$0xff]  }
  0x9a   :  { %768 = vmatpush1.bf16.msra.mxu0 %v2996_v32  ;;  %v3010_v39 = vld [vmem:[%s4444_s20 + $0x274] ss:$8 sps:$4 sm:$0xff]   ;;  %v3048_v40 = vld [vmem:[%s4446_s3 + $0x68] sm:$0xff]   ;;  %v3008_v41 = vld [vmem:[%s4444_s20 + $0x270] ss:$8 sps:$4 sm:$0xff]   ;;  %v3381_v6 = vmov 0.0  }
  0x9b   :  { %769 = vmatprep.subr.bf16.mxu0 %v3001_v33  ;;  %v3013_v43 = vld [vmem:[%s4444_s20 + $0x284] ss:$8 sps:$4 sm:$0xff]   ;;  %2769 = vmatprep.subr.bf16.mxu1 %v3048_v40  ;;  %v3011_v44 = vld [vmem:[%s4444_s20 + $0x280] ss:$8 sps:$4 sm:$0xff]   ;;  %v3016_v45 = vld [vmem:[%s4444_s20 + $0x294] ss:$8 sps:$4 sm:$0xff]  }
  0x9c   :  { %v3014_v46 = vld [vmem:[%s4444_s20 + $0x290] ss:$8 sps:$4 sm:$0xff]   ;;  %v3019_v47 = vld [vmem:[%s4444_s20 + $0x2a4] ss:$8 sps:$4 sm:$0xff]   ;;  %v3017_v48 = vld [vmem:[%s4444_s20 + $0x2a0] ss:$8 sps:$4 sm:$0xff]  }
  0x9d   :  { %v3022_v49 = vld [vmem:[%s4444_s20 + $0x2b4] ss:$8 sps:$4 sm:$0xff]   ;;  %v3020_v50 = vld [vmem:[%s4444_s20 + $0x2b0] ss:$8 sps:$4 sm:$0xff]   ;;  %v3025_v51 = vld [vmem:[%s4444_s20 + $0x2c4] ss:$8 sps:$4 sm:$0xff]  }
  0x9e   :  { %770 = vmatpush1.bf16.msra.mxu0 %v2999_v34  ;;  %v3023_v52 = vld [vmem:[%s4444_s20 + $0x2c0] ss:$8 sps:$4 sm:$0xff]   ;;  %v3028_v53 = vld [vmem:[%s4444_s20 + $0x2d4] ss:$8 sps:$4 sm:$0xff]   ;;  %v3026_v54 = vld [vmem:[%s4444_s20 + $0x2d0] ss:$8 sps:$4 sm:$0xff]  }
  0x9f   :  { %771 = vmatprep.subr.bf16.mxu0 %v3004_v35  ;;  %v3031_v55 = vld [vmem:[%s4444_s20 + $0x2e4] ss:$8 sps:$4 sm:$0xff]   ;;  %v3029_v56 = vld [vmem:[%s4444_s20 + $0x2e0] ss:$8 sps:$4 sm:$0xff]   ;;  %v3036_v57 = vld [vmem:[%s4444_s20 + $0x2f4] ss:$8 sps:$4 sm:$0xff]  }
  0xa0   :  { %v3034_v58 = vld [vmem:[%s4444_s20 + $0x2f0] ss:$8 sps:$4 sm:$0xff]   ;;  %v65_v59 = vld [vmem:[%s4445_s0 + $0x20] sm:$0xff]  ;;  %v3049_v61 = vld [vmem:[%s4446_s3 + $0x28] sm:$0xff]   ;;  %v3853_v8 = vshrl.u32 %v175_v7, 7  ;;  %s4447_s24 = sld [smem:[#allocation14_spill]] }
  0xa1   :  { %v72_v60 = vpack.c.bf16 %v65_v59, %v65_v59  ;;  %2770 = vmatpush3.bf16.msra.mxu1 %v3049_v61  ;;  %v3050_v62 = vld [vmem:[%s4446_s3 + $0x70] sm:$0xff]   ;;  %v3052_v1 = vld [vmem:[%s4446_s3 + $0x78] sm:$0xff]   ;;  %v3054_v25 = vld [vmem:[%s4422_s5] sm:$0xff]   ;;  %vm3382_vm1 = vmmov 0   ;;  %vm1276_vm2 = vcmask 261120   ;;  %s3383_s30 = smov [#allocation4]  }
  0xa2   :  { %772 = vmatpush1.bf16.msra.mxu0 %v3002_v36  ;;  %v3051_v63 = vld [vmem:[%s4446_s3 + $0x30] sm:$0xff]   ;;  %2771 = vmatprep.subr.bf16.mxu1 %v3050_v62  ;;  %v3053_v3 = vld [vmem:[%s4446_s3 + $0x38] sm:$0xff]   ;;  %v3856_v9 = vsub.s32 0, %v3853_v8  ;;  %v3862_v11 = vsub.s32 1, %v3853_v8  ;;  %v3055_v27 = vld [vmem:[%s4422_s5 + $0x8] sm:$0xff]   ;;  %s2447_s21 = sshll.u32 %s3383_s30, 4  ;;  %s2448_s21 = int_to_ptr.vmem [resolvable:$true] %s2447_s21 }
  0xa3   :  { %773 = vmatprep.subr.bf16.mxu0 %v3007_v37  ;;  %v3056_v28 = vld [vmem:[%s4422_s5 + $0x10] sm:$0xff]   ;;  %v3057_v29 = vld [vmem:[%s4422_s5 + $0x18] sm:$0xff]   ;;  %v3058_v30 = vld [vmem:[%s4422_s5 + $0x20] sm:$0xff]   ;;  %p3291_p1 = scmp.lt.s32.totalorder %s2448_s21, %s2448_s21 }
  0xa4   :  { %v3059_v31 = vld [vmem:[%s4422_s5 + $0x28] sm:$0xff]   ;;  %v3060_v32 = vld [vmem:[%s4422_s5 + $0x30] sm:$0xff]   ;;  %v3061_v33 = vld [vmem:[%s4422_s5 + $0x38] sm:$0xff]  }
  0xa5   :  { %2772 = vmatpush3.bf16.msra.mxu1 %v3051_v63  ;;  %v2585_v35 = vld [vmem:[%s4421_s4] ss:$0 sm:$0xff] }
  0xa6   :  { %774 = vmatpush1.bf16.msra.mxu0 %v3005_v38  ;;  %2773 = vmatprep.subr.bf16.mxu1 %v3052_v1  ;;  %v173_v10 = vld [vmem:[%s4447_s24] sm:$0x3] }
  0xa7   :  { %775 = vmatprep.subr.bf16.mxu0 %v3010_v39  ;;  %v178_v12 = vrot.slane %v173_v10, %v3856_v9  ;;  %v182_v13 = vrot.slane %v173_v10, %v3862_v11  ;;  %v2611_v61 = vld [vmem:[%s4425_s8] ss:$0 sm:$0xff] }
  0xa9   :  { %2774 = vmatpush3.bf16.msra.mxu1 %v3053_v3 }
  0xaa   :  { %776 = vmatpush1.bf16.msra.mxu0 %v3008_v41  ;;  %2824 = vmatprep.subr.bf16.mxu1 %v3381_v6 }
  0xab   :  { %777 = vmatprep.subr.bf16.mxu0 %v3013_v43  ;;  %v3062_v43 = vld [vmem:[%s4424_s7] sm:$0xff]  }
  0xae   :  { %778 = vmatpush1.bf16.msra.mxu0 %v3011_v44 }
  0xaf   :  { %779 = vmatprep.subr.bf16.mxu0 %v3016_v45  ;;  %v3063_v45 = vld [vmem:[%s4424_s7 + $0x8] sm:$0xff]  }
  0xb2   :  { %780 = vmatpush1.bf16.msra.mxu0 %v3014_v46  ;;  %v3064_v46 = vld [vmem:[%s4424_s7 + $0x10] sm:$0xff]  }
  0xb3   :  { %781 = vmatprep.subr.bf16.mxu0 %v3019_v47  ;;  %v3065_v47 = vld [vmem:[%s4424_s7 + $0x18] sm:$0xff]  }
  0xb6   :  { %782 = vmatpush1.bf16.msra.mxu0 %v3017_v48  ;;  %v3066_v48 = vld [vmem:[%s4424_s7 + $0x20] sm:$0xff]  }
  0xb7   :  { %783 = vmatprep.subr.bf16.mxu0 %v3022_v49  ;;  %v3067_v49 = vld [vmem:[%s4424_s7 + $0x28] sm:$0xff]  }
  0xba   :  { %784 = vmatpush1.bf16.msra.mxu0 %v3020_v50  ;;  %v3068_v50 = vld [vmem:[%s4424_s7 + $0x30] sm:$0xff]  }
  0xbb   :  { %785 = vmatprep.subr.bf16.mxu0 %v3025_v51  ;;  %v3069_v51 = vld [vmem:[%s4424_s7 + $0x38] sm:$0xff]  }
  0xbe   :  { %786 = vmatpush1.bf16.msra.mxu0 %v3023_v52  ;;  %v3070_v52 = vld [vmem:[%s4426_s9] sm:$0xff]  }
  0xbf   :  { %787 = vmatprep.subr.bf16.mxu0 %v3028_v53  ;;  %v3071_v53 = vld [vmem:[%s4426_s9 + $0x8] sm:$0xff]   ;;  %s3286_s9 = scalar_lea.vmem %s2448_s21, 128 }
  0xc0   :  { %p3287_p0 = scmp.ne.s32.totalorder %s2448_s21, %s3286_s9  ;;  %p3292_p2 = scmp.lt.s32.totalorder %s3286_s9, %s3286_s9 }
  0xc2   :  { %788 = vmatpush1.bf16.msra.mxu0 %v3026_v54  ;;  %v3074_v54 = vld [vmem:[%s4428_s11 + $0x4] ss:$8 sps:$4 sm:$0xff]   ;;  %p3293_p3 = por %p3292_p2, %p3291_p1 }
  0xc3   :  { %789 = vmatprep.subr.bf16.mxu0 %v3031_v55  ;;  %v2602_v55 = vld [vmem:[%s4423_s6] ss:$0 sm:$0xff] }
  0xc4   :  { %p3294_p4 = pnand %p3293_p3, %p3287_p0 }
  0xc6   :  { %790 = vmatpush1.bf16.msra.mxu0 %v3029_v56 }
  0xc7   :  { %791 = vmatprep.subr.bf16.mxu0 %v3036_v57 }
  0xca   :  { %792 = vmatpush1.bf16.msra.mxu0 %v3034_v58 }
  0xcd   :  { %794 = vmatmul.mubr.bf16.vlgmr.msra.gmra.mrb[0].mxu0 %v72_v60 }
  0xf1   :  { %v836_v0 = vpop.f32.mrb[0].mxu1 }
  0xf2   :  { %v838_v2 = vpop.f32.mrb[1].mxu1 }
  0xf3   :  { %v840_v4 = vpop.f32.mrb[2].mxu1 }
  0xf4   :  { %v841_v5 = vpop.f32.mrb[3].mxu1 }
  0xf5   :  { %v1246_v5 = vld [vmem:[%s4432_s15] sm:$0xff] }
 0x1a0   :  { %v795_v14 = vpop.f32.mrb[0].mxu0 }
 0x1a1   :  { %v2872_v15 = vadd.f32 %v795_v14, %v178_v12  ;;  %v797_v16 = vpop.f32.mrb[1].mxu0  ;;  %v3072_v12 = vld [vmem:[%s4428_s11] ss:$8 sps:$4 sm:$0xff]   ;;  %v3077_v14 = vld [vmem:[%s4428_s11 + $0x14] ss:$8 sps:$4 sm:$0xff]  }
 0x1a2   :  { %v2874_v17 = vadd.f32 %v797_v16, %v182_v13  ;;  %v799_v18 = vpop.f32.mrb[2].mxu0  ;;  %v3080_v16 = vld [vmem:[%s4428_s11 + $0x24] ss:$8 sps:$4 sm:$0xff]  }
 0x1a3   :  { %v2873_v19 = vadd.f32 %v2872_v15, %v836_v0  ;;  %v800_v20 = vpop.f32.mrb[3].mxu0  ;;  %v3075_v15 = vld [vmem:[%s4428_s11 + $0x10] ss:$8 sps:$4 sm:$0xff]   ;;  %v3083_v18 = vld [vmem:[%s4428_s11 + $0x34] ss:$8 sps:$4 sm:$0xff]  }
 0x1a4   :  { %v2875_v21 = vadd.f32 %v2874_v17, %v838_v2  ;;  %v3078_v17 = vld [vmem:[%s4428_s11 + $0x20] ss:$8 sps:$4 sm:$0xff]  }
 0x1a5   :  { %v843_v22 = vmax.f32 %v2873_v19, 0.0  ;;  %v3086_v19 = vld [vmem:[%s4428_s11 + $0x44] ss:$8 sps:$4 sm:$0xff]   ;;  %v3084_v20 = vld [vmem:[%s4428_s11 + $0x40] ss:$8 sps:$4 sm:$0xff]  }
 0x1a6   :  { %v844_v23 = vmax.f32 %v2875_v21, 0.0  ;;  %v3089_v21 = vld [vmem:[%s4428_s11 + $0x54] ss:$8 sps:$4 sm:$0xff]  }
 0x1a7   :  { %v845_v26 = vpack.c.bf16 %v843_v22, %v843_v22  ;;  %v3087_v22 = vld [vmem:[%s4428_s11 + $0x50] ss:$8 sps:$4 sm:$0xff]  }
 0x1a8   :  { %v846_v24 = vpack.c.bf16 %v844_v23, %v844_v23  ;;  %v3092_v23 = vld [vmem:[%s4428_s11 + $0x64] ss:$8 sps:$4 sm:$0xff]  }
 0x1aa   :  { %1014 = vmatprep.mubr.bf16.mxu1 %v846_v24  ;;  %v3090_v24 = vld [vmem:[%s4428_s11 + $0x60] ss:$8 sps:$4 sm:$0xff]  }
 0x1ab   :  { %1015 = vmatmul.mubr.bf16.vlgmr.msra.gmra.mrb[4].mxu1 %v845_v26  ;;  %v3093_v26 = vld [vmem:[%s4428_s11 + $0x70] ss:$8 sps:$4 sm:$0xff]  }
 0x1ac   :  { %2825 = vmatpush3.bf16.msra.mxu1 %v3054_v25  ;;  %2840 = vmatprep.mubr.msk.bf16.mxu1 %vm3382_vm1, %v3381_v6  ;;  %v3095_v25 = vld [vmem:[%s4428_s11 + $0x74] ss:$8 sps:$4 sm:$0xff]  }
 0x1ad   :  { %2826 = vmatprep.subr.bf16.mxu1 %v3381_v6 }
 0x1b0   :  { %2827 = vmatpush3.bf16.msra.mxu1 %v3055_v27  ;;  %v3098_v27 = vld [vmem:[%s4430_s13 + $0x4] ss:$28 sps:$4 sm:$0xff]  }
 0x1b1   :  { %2828 = vmatprep.subr.bf16.mxu1 %v3381_v6 }
 0x1b4   :  { %2829 = vmatpush3.bf16.msra.mxu1 %v3056_v28  ;;  %v3099_v28 = vld [vmem:[%s4430_s13 + $0x8] ss:$28 sps:$4 sm:$0xff]  }
 0x1b5   :  { %2830 = vmatprep.subr.bf16.mxu1 %v3381_v6 }
 0x1b8   :  { %2831 = vmatpush3.bf16.msra.mxu1 %v3057_v29  ;;  %v3101_v29 = vld [vmem:[%s4430_s13 + $0xc] ss:$28 sps:$4 sm:$0xff]  }
 0x1b9   :  { %2832 = vmatprep.subr.bf16.mxu1 %v3381_v6  ;;  %2257 = vmatprep.subr.bf16.mxu0 %v3101_v29  ;;  %v3174_v29 = vld [vmem:[%s4430_s13 + $0x2d8] ss:$28 sps:$4 sm:$0xff]  }
 0x1ba   :  { %2258 = vmatpush1.bf16.msra.mxu0 %v3099_v28  ;;  %v3176_v28 = vld [vmem:[%s4430_s13 + $0x2dc] ss:$28 sps:$4 sm:$0xff]  }
 0x1bc   :  { %2833 = vmatpush3.bf16.msra.mxu1 %v3058_v30  ;;  %v3107_v30 = vld [vmem:[%s4430_s13 + $0x44] ss:$28 sps:$4 sm:$0xff]  }
 0x1bd   :  { %2834 = vmatprep.subr.bf16.mxu1 %v3381_v6  ;;  %2259 = vmatprep.subr.bf16.mxu0 %v3107_v30  ;;  %v3182_v30 = vld [vmem:[%s4430_s13 + $0x314] ss:$28 sps:$4 sm:$0xff]  }
 0x1c0   :  { %2835 = vmatpush3.bf16.msra.mxu1 %v3059_v31  ;;  %v3105_v31 = vld [vmem:[%s4430_s13 + $0x40] ss:$28 sps:$4 sm:$0xff]  }
 0x1c1   :  { %2836 = vmatprep.subr.bf16.mxu1 %v3381_v6  ;;  %2260 = vmatpush1.bf16.msra.mxu0 %v3105_v31  ;;  %v3185_v31 = vld [vmem:[%s4430_s13 + $0x31c] ss:$28 sps:$4 sm:$0xff]  }
 0x1c4   :  { %2837 = vmatpush3.bf16.msra.mxu1 %v3060_v32  ;;  %v3113_v32 = vld [vmem:[%s4430_s13 + $0x7c] ss:$28 sps:$4 sm:$0xff]  }
 0x1c5   :  { %2838 = vmatprep.subr.bf16.mxu1 %v3381_v6  ;;  %2261 = vmatprep.subr.bf16.mxu0 %v3113_v32  ;;  %v3180_v32 = vld [vmem:[%s4430_s13 + $0x310] ss:$28 sps:$4 sm:$0xff]  }
 0x1c8   :  { %2839 = vmatpush3.bf16.msra.mxu1 %v3061_v33  ;;  %v3111_v33 = vld [vmem:[%s4430_s13 + $0x78] ss:$28 sps:$4 sm:$0xff]  }
 0x1c9   :  { %2844 = vmatprep.subr.bf16.mxu1 %v3381_v6  ;;  %2262 = vmatpush1.bf16.msra.mxu0 %v3111_v33  ;;  %v3183_v33 = vld [vmem:[%s4430_s13 + $0x318] ss:$28 sps:$4 sm:$0xff]  }
 0x27e   :  { %v2775_v34 = vpop.f32.mrb[4].mxu1 }
 0x27f   :  { %v2776_v36 = vpop.f32.mrb[5].mxu1 }
 0x280   :  { %v2777_v37 = vadd.f32 %v2776_v36, %v2775_v34  ;;  %v2778_v38 = vpop.f32.mrb[6].mxu1  ;;  %v3119_v34 = vld [vmem:[%s4430_s13 + $0xb4] ss:$28 sps:$4 sm:$0xff]   ;;  %v3125_v36 = vld [vmem:[%s4430_s13 + $0xec] ss:$28 sps:$4 sm:$0xff]  }
 0x281   :  { %v2779_v39 = vpop.f32.mrb[7].mxu1  ;;  %2263 = vmatprep.subr.bf16.mxu0 %v3119_v34  ;;  %v3131_v38 = vld [vmem:[%s4430_s13 + $0x124] ss:$28 sps:$4 sm:$0xff]   ;;  %v3188_v34 = vld [vmem:[%s4430_s13 + $0x34c] ss:$28 sps:$4 sm:$0xff]  }
 0x282   :  { %v1017_v40 = vadd.f32 %v2777_v37, %v2585_v35  ;;  %v3117_v35 = vld [vmem:[%s4430_s13 + $0xb0] ss:$28 sps:$4 sm:$0xff]   ;;  %v3123_v37 = vld [vmem:[%s4430_s13 + $0xe8] ss:$28 sps:$4 sm:$0xff]   ;;  %v3129_v39 = vld [vmem:[%s4430_s13 + $0x120] ss:$28 sps:$4 sm:$0xff]  }
 0x283   :  { %2264 = vmatpush1.bf16.msra.mxu0 %v3117_v35  ;;  %v3191_v35 = vld [vmem:[%s4430_s13 + $0x354] ss:$28 sps:$4 sm:$0xff]  }
 0x284   :  { %v1022_v41 = vmax.f32 %v1017_v40, 0.0  ;;  %2265 = vmatprep.subr.bf16.mxu0 %v3125_v36  ;;  %v3137_v40 = vld [vmem:[%s4430_s13 + $0x15c] ss:$28 sps:$4 sm:$0xff]   ;;  %v3186_v36 = vld [vmem:[%s4430_s13 + $0x348] ss:$28 sps:$4 sm:$0xff]  }
 0x286   :  { %v1023_v44 = vpack.c.bf16 %v1022_v41, %v1022_v41  ;;  %v3135_v41 = vld [vmem:[%s4430_s13 + $0x158] ss:$28 sps:$4 sm:$0xff]  }
 0x287   :  { %2266 = vmatpush1.bf16.msra.mxu0 %v3123_v37  ;;  %v3189_v37 = vld [vmem:[%s4430_s13 + $0x350] ss:$28 sps:$4 sm:$0xff]  }
 0x288   :  { %2841 = vmatmul.mubr.bf16.vlgmr.msra.gmra.mrb[8].mxu1 %v1023_v44  ;;  %2267 = vmatprep.subr.bf16.mxu0 %v3131_v38  ;;  %v3194_v38 = vld [vmem:[%s4430_s13 + $0x14] ss:$28 sps:$4 sm:$0xff]  }
 0x289   :  { %2845 = vmatpush3.bf16.msra.mxu1 %v3062_v43  ;;  %2860 = vmatprep.mubr.msk.bf16.mxu1 %vm3382_vm1, %v3381_v6  ;;  %v3143_v43 = vld [vmem:[%s4430_s13 + $0x194] ss:$28 sps:$4 sm:$0xff]  }
 0x28a   :  { %2846 = vmatprep.subr.bf16.mxu1 %v3381_v6 }
 0x28b   :  { %2268 = vmatpush1.bf16.msra.mxu0 %v3129_v39  ;;  %v3195_v39 = vld [vmem:[%s4430_s13 + $0x1d8] ss:$28 sps:$4 sm:$0xff]  }
 0x28c   :  { %2269 = vmatprep.subr.bf16.mxu0 %v3137_v40  ;;  %v1338_v40 = vld [vmem:[%s4429_s12] sm:$0x3] }
 0x28d   :  { %2847 = vmatpush3.bf16.msra.mxu1 %v3063_v45  ;;  %v3149_v45 = vld [vmem:[%s4430_s13 + $0x1cc] ss:$28 sps:$4 sm:$0xff]  }
 0x28e   :  { %2848 = vmatprep.subr.bf16.mxu1 %v3381_v6 }
 0x28f   :  { %2270 = vmatpush1.bf16.msra.mxu0 %v3135_v41  ;;  %v1343_v41 = vrot.slane %v1338_v40, %v3856_v9 }
 0x290   :  { %2271 = vmatprep.subr.bf16.mxu0 %v3143_v43  ;;  %v1347_v43 = vrot.slane %v1338_v40, %v3862_v11 }
 0x291   :  { %2849 = vmatpush3.bf16.msra.mxu1 %v3064_v46  ;;  %v3147_v46 = vld [vmem:[%s4430_s13 + $0x1c8] ss:$28 sps:$4 sm:$0xff]  }
 0x292   :  { %2850 = vmatprep.subr.bf16.mxu1 %v3381_v6 }
 0x295   :  { %2851 = vmatpush3.bf16.msra.mxu1 %v3065_v47  ;;  %v3155_v47 = vld [vmem:[%s4430_s13 + $0x204] ss:$28 sps:$4 sm:$0xff]  }
 0x296   :  { %2852 = vmatprep.subr.bf16.mxu1 %v3381_v6 }
 0x299   :  { %2853 = vmatpush3.bf16.msra.mxu1 %v3066_v48  ;;  %v3153_v48 = vld [vmem:[%s4430_s13 + $0x200] ss:$28 sps:$4 sm:$0xff]  }
 0x29a   :  { %2854 = vmatprep.subr.bf16.mxu1 %v3381_v6 }
 0x29d   :  { %2855 = vmatpush3.bf16.msra.mxu1 %v3067_v49  ;;  %v3161_v49 = vld [vmem:[%s4430_s13 + $0x23c] ss:$28 sps:$4 sm:$0xff]  }
 0x29e   :  { %2856 = vmatprep.subr.bf16.mxu1 %v3381_v6 }
 0x2a1   :  { %2857 = vmatpush3.bf16.msra.mxu1 %v3068_v50  ;;  %v3159_v50 = vld [vmem:[%s4430_s13 + $0x238] ss:$28 sps:$4 sm:$0xff]  }
 0x2a2   :  { %2858 = vmatprep.subr.bf16.mxu1 %v3381_v6 }
 0x2a5   :  { %2859 = vmatpush3.bf16.msra.mxu1 %v3069_v51  ;;  %v3167_v51 = vld [vmem:[%s4430_s13 + $0x274] ss:$28 sps:$4 sm:$0xff]  }
 0x2a6   :  { %2864 = vmatprep.subr.bf16.mxu1 %v3381_v6 }
 0x2a8   :  { %2861 = vmatmul.mubr.bf16.vlgmr.msra.gmra.mrb[12].mxu1 %v1023_v44  ;;  %v3141_v44 = vld [vmem:[%s4430_s13 + $0x190] ss:$28 sps:$4 sm:$0xff]  }
 0x2a9   :  { %2868 = vmatprep.mubr.msk.bf16.mxu1 %vm3382_vm1, %v3381_v6  ;;  %2865 = vmatpush3.bf16.msra.mxu1 %v3070_v52  ;;  %v3165_v52 = vld [vmem:[%s4430_s13 + $0x270] ss:$28 sps:$4 sm:$0xff]  }
 0x2aa   :  { %2866 = vmatprep.subr.bf16.mxu1 %v3381_v6  ;;  %2272 = vmatpush1.bf16.msra.mxu0 %v3141_v44 }
 0x2ab   :  { %2273 = vmatprep.subr.bf16.mxu0 %v3149_v45 }
 0x2ad   :  { %2867 = vmatpush3.bf16.msra.mxu1 %v3071_v53  ;;  %v3173_v53 = vld [vmem:[%s4430_s13 + $0x2ac] ss:$28 sps:$4 sm:$0xff]  }
 0x2ae   :  { %1430 = vmatprep.subr.bf16.mxu1 %v3074_v54  ;;  %2274 = vmatpush1.bf16.msra.mxu0 %v3147_v46  ;;  %v3171_v54 = vld [vmem:[%s4430_s13 + $0x2a8] ss:$28 sps:$4 sm:$0xff]  }
 0x2af   :  { %2275 = vmatprep.subr.bf16.mxu0 %v3155_v47 }
 0x2b2   :  { %2276 = vmatpush1.bf16.msra.mxu0 %v3153_v48 }
 0x2b3   :  { %2277 = vmatprep.subr.bf16.mxu0 %v3161_v49 }
 0x2b6   :  { %2278 = vmatpush1.bf16.msra.mxu0 %v3159_v50 }
 0x2b7   :  { %2279 = vmatprep.subr.bf16.mxu0 %v3167_v51 }
 0x2ba   :  { %2280 = vmatpush1.bf16.msra.mxu0 %v3165_v52 }
 0x2bb   :  { %2281 = vmatprep.subr.bf16.mxu0 %v3173_v53  ;;  %v3192_v53 = vld [vmem:[%s4430_s13 + $0x10] ss:$28 sps:$4 sm:$0xff]  }
 0x2be   :  { %2282 = vmatpush1.bf16.msra.mxu0 %v3171_v54  ;;  %v3196_v54 = vld [vmem:[%s4430_s13 + $0x18] ss:$28 sps:$4 sm:$0xff]  }
 0x35b   :  { %v1129_v56 = vpop.f32.mrb[8].mxu1 }
 0x35c   :  { %v1130_v57 = vadd.f32 %v2602_v55, %v1129_v56  ;;  %v2842_v58 = vpop.f32.mrb[9].mxu1  ;;  %v3179_v55 = vld [vmem:[%s4430_s13 + $0x2e4] ss:$28 sps:$4 sm:$0xff]  }
 0x35d   :  { %v1132_v59 = vpop.f32.mrb[10].mxu1  ;;  %v3177_v56 = vld [vmem:[%s4430_s13 + $0x2e0] ss:$28 sps:$4 sm:$0xff]   ;;  %2283 = vmatprep.subr.bf16.mxu0 %v3179_v55 }
 0x35e   :  { %v2843_v60 = vpop.f32.mrb[11].mxu1  ;;  %2428 = vst.msk [vmem:[#allocation4] sm:$0xff] %vm1276_vm2, %v1130_v57  ;;  %2284 = vmatpush1.bf16.msra.mxu0 %v3177_v56  ;;  %v3199_v56 = vld [vmem:[%s4430_s13 + $0x4c] ss:$28 sps:$4 sm:$0xff]  }
 0x35f   :  { %2285 = vmatprep.subr.bf16.mxu0 %v3185_v31  ;;  %v3244_v31 = vld [vmem:[%s4430_s13 + $0x2b0] ss:$28 sps:$4 sm:$0xff]  }
 0x362   :  { %2286 = vmatpush1.bf16.msra.mxu0 %v3183_v33  ;;  %v3247_v33 = vld [vmem:[%s4430_s13 + $0x2e8] ss:$28 sps:$4 sm:$0xff]  }
 0x363   :  { %2287 = vmatprep.subr.bf16.mxu0 %v3191_v35  ;;  %v3250_v35 = vld [vmem:[%s4430_s13 + $0x320] ss:$28 sps:$4 sm:$0xff]  }
 0x366   :  { %2288 = vmatpush1.bf16.msra.mxu0 %v3189_v37  ;;  %v3253_v37 = vld [vmem:[%s4430_s13 + $0x358] ss:$28 sps:$4 sm:$0xff]  }
 0x367   :  { %2802 = vmatprep.subr.bf16.mxu0 %v3195_v39 }
 0x37b   :  { %v1240_v62 = vpop.f32.mrb[12].mxu1 }
 0x37c   :  { %v1241_v63 = vadd.f32 %v2611_v61, %v1240_v62  ;;  %v2862_v0 = vpop.f32.mrb[13].mxu1 }
 0x37d   :  { %v1243_v1 = vpop.f32.mrb[14].mxu1  ;;  %v3096_v0 = vld [vmem:[%s4430_s13] ss:$28 sps:$4 sm:$0xff]  }
 0x37e   :  { %v1247_v2 = vmul.f32 0.5, %v1241_v63  ;;  %v2863_v3 = vpop.f32.mrb[15].mxu1  ;;  %2429 = vst.msk [vmem:[#allocation6] sm:$0xff] %vm1276_vm2, %v1241_v63 }
 0x37f   :  { %v3102_v3 = vld [vmem:[%s4430_s13 + $0x38] ss:$28 sps:$4 sm:$0xff]  }
 0x380   :  { %v1248_v4 = vmul.f32 1.442695, %v1247_v2  ;;  %v3104_v2 = vld [vmem:[%s4430_s13 + $0x3c] ss:$28 sps:$4 sm:$0xff]  }
 0x382   :  { %3256 = vpow2.f32 %v1248_v4  ;;  %v3110_v4 = vld [vmem:[%s4430_s13 + $0x74] ss:$28 sps:$4 sm:$0xff]  }
 0x38c   :  { %v3257_v6 = vpop.eup %3256 }
 0x38d   :  { %v1250_v7 = vmul.f32 %v3257_v6, %v1246_v5  ;;  %v3108_v5 = vld [vmem:[%s4430_s13 + $0x70] ss:$28 sps:$4 sm:$0xff]  }
 0x38e   :  { %v3116_v6 = vld [vmem:[%s4430_s13 + $0xac] ss:$28 sps:$4 sm:$0xff]  }
 0x38f   :  { %v1251_v10 = vadd.f32 %v1250_v7, %v1130_v57  ;;  %v2620_v57 = vld [vmem:[%s4427_s10] ss:$0 sm:$0xff]  ;;  %v3114_v7 = vld [vmem:[%s4430_s13 + $0xa8] ss:$28 sps:$4 sm:$0xff]  }
 0x391   :  { %v1252_v13 = vpack.c.bf16 %v1251_v10, %v1251_v10  ;;  %2430 = vst.msk [vmem:[#allocation7] sm:$0xff] %vm1276_vm2, %v1251_v10  ;;  %v3122_v10 = vld [vmem:[%s4430_s13 + $0xe4] ss:$28 sps:$4 sm:$0xff]  }
 0x393   :  { %2869 = vmatmul.mubr.msk.bf16.vlgmr.msra.gmra.mrb[16].mxu1 %vm1276_vm2, %v1252_v13  ;;  %v3128_v13 = vld [vmem:[%s4430_s13 + $0x11c] ss:$28 sps:$4 sm:$0xff]  }
 0x394   :  { %1431 = vmatpush1.bf16.msra.mxu1 %v3072_v12  ;;  %1462 = vmatprep.mubr.bf16.mxu1 %v3380_v42  ;;  %v3081_v42 = vld [vmem:[%s4428_s11 + $0x30] ss:$8 sps:$4 sm:$0xff]   ;;  %v3120_v12 = vld [vmem:[%s4430_s13 + $0xe0] ss:$28 sps:$4 sm:$0xff]  }
 0x395   :  { %1432 = vmatprep.subr.bf16.mxu1 %v3077_v14  ;;  %v3126_v14 = vld [vmem:[%s4430_s13 + $0x118] ss:$28 sps:$4 sm:$0xff]  }
 0x398   :  { %1433 = vmatpush1.bf16.msra.mxu1 %v3075_v15  ;;  %v3134_v15 = vld [vmem:[%s4430_s13 + $0x154] ss:$28 sps:$4 sm:$0xff]  }
 0x399   :  { %1434 = vmatprep.subr.bf16.mxu1 %v3080_v16  ;;  %v3132_v16 = vld [vmem:[%s4430_s13 + $0x150] ss:$28 sps:$4 sm:$0xff]  }
 0x39c   :  { %1435 = vmatpush1.bf16.msra.mxu1 %v3078_v17  ;;  %v3140_v17 = vld [vmem:[%s4430_s13 + $0x18c] ss:$28 sps:$4 sm:$0xff]  }
 0x39d   :  { %1436 = vmatprep.subr.bf16.mxu1 %v3083_v18  ;;  %v3138_v18 = vld [vmem:[%s4430_s13 + $0x188] ss:$28 sps:$4 sm:$0xff]  }
 0x3a0   :  { %1437 = vmatpush1.bf16.msra.mxu1 %v3081_v42  ;;  %v3146_v42 = vld [vmem:[%s4430_s13 + $0x1c4] ss:$28 sps:$4 sm:$0xff]  }
 0x3a1   :  { %1438 = vmatprep.subr.bf16.mxu1 %v3086_v19  ;;  %v3144_v19 = vld [vmem:[%s4430_s13 + $0x1c0] ss:$28 sps:$4 sm:$0xff]  }
 0x3a4   :  { %1439 = vmatpush1.bf16.msra.mxu1 %v3084_v20  ;;  %v3152_v20 = vld [vmem:[%s4430_s13 + $0x1fc] ss:$28 sps:$4 sm:$0xff]  }
 0x3a5   :  { %1440 = vmatprep.subr.bf16.mxu1 %v3089_v21  ;;  %v3150_v21 = vld [vmem:[%s4430_s13 + $0x1f8] ss:$28 sps:$4 sm:$0xff]  }
 0x3a8   :  { %1441 = vmatpush1.bf16.msra.mxu1 %v3087_v22  ;;  %v3158_v22 = vld [vmem:[%s4430_s13 + $0x234] ss:$28 sps:$4 sm:$0xff]  }
 0x3a9   :  { %1442 = vmatprep.subr.bf16.mxu1 %v3092_v23  ;;  %v3156_v23 = vld [vmem:[%s4430_s13 + $0x230] ss:$28 sps:$4 sm:$0xff]  }
 0x3ac   :  { %1443 = vmatpush1.bf16.msra.mxu1 %v3090_v24  ;;  %v3164_v24 = vld [vmem:[%s4430_s13 + $0x26c] ss:$28 sps:$4 sm:$0xff]  }
 0x3ad   :  { %1444 = vmatprep.subr.bf16.mxu1 %v3095_v25  ;;  %v3162_v25 = vld [vmem:[%s4430_s13 + $0x268] ss:$28 sps:$4 sm:$0xff]  }
 0x3b0   :  { %1445 = vmatpush1.bf16.msra.mxu1 %v3093_v26  ;;  %v3170_v26 = vld [vmem:[%s4430_s13 + $0x2a4] ss:$28 sps:$4 sm:$0xff]  }
 0x3b1   :  { %2216 = vmatprep.subr.bf16.mxu1 %v3098_v27  ;;  %v3168_v27 = vld [vmem:[%s4430_s13 + $0x2a0] ss:$28 sps:$4 sm:$0xff]  }
 0x466   :  { %v1314_v58 = vpop.f32.mrb[16].mxu1 }
 0x467   :  { %v1315_v59 = vadd.f32 %v2620_v57, %v1314_v58  ;;  %v2870_v60 = vpop.f32.mrb[17].mxu1  ;;  %v3200_v57 = vld [vmem:[%s4430_s13 + $0x210] ss:$28 sps:$4 sm:$0xff]   ;;  %v3197_v58 = vld [vmem:[%s4430_s13 + $0x48] ss:$28 sps:$4 sm:$0xff]  }
 0x468   :  { %v1317_v61 = vpop.f32.mrb[18].mxu1  ;;  %v3204_v60 = vld [vmem:[%s4430_s13 + $0x84] ss:$28 sps:$4 sm:$0xff]  }
 0x469   :  { %v1320_v62 = vmax.f32 %v1315_v59, 0.0  ;;  %v2871_v63 = vpop.f32.mrb[19].mxu1  ;;  %v3201_v59 = vld [vmem:[%s4430_s13 + $0x50] ss:$28 sps:$4 sm:$0xff]   ;;  %v3205_v61 = vld [vmem:[%s4430_s13 + $0x248] ss:$28 sps:$4 sm:$0xff]  }
 0x46a   :  { %v3206_v63 = vld [vmem:[%s4430_s13 + $0x88] ss:$28 sps:$4 sm:$0xff]  }
 0x46b   :  { %v1321_v1 = vpack.c.bf16 %v1320_v62, %v1320_v62  ;;  %v3202_v62 = vld [vmem:[%s4430_s13 + $0x80] ss:$28 sps:$4 sm:$0xff]  }
 0x46d   :  { %1463 = vmatmul.mubr.bf16.vlgmr.msra.gmra.mrb[20].mxu1 %v1321_v1  ;;  %v3210_v1 = vld [vmem:[%s4430_s13 + $0x280] ss:$28 sps:$4 sm:$0xff]  }
 0x46e   :  { %2217 = vmatpush1.bf16.msra.mxu1 %v3096_v0  ;;  %v3209_v0 = vld [vmem:[%s4430_s13 + $0xbc] ss:$28 sps:$4 sm:$0xff]  }
 0x46f   :  { %2218 = vmatprep.subr.bf16.mxu1 %v3104_v2  ;;  %v3207_v2 = vld [vmem:[%s4430_s13 + $0xb8] ss:$28 sps:$4 sm:$0xff]  }
 0x472   :  { %2219 = vmatpush1.bf16.msra.mxu1 %v3102_v3  ;;  %v3211_v3 = vld [vmem:[%s4430_s13 + $0xc0] ss:$28 sps:$4 sm:$0xff]  }
 0x473   :  { %2220 = vmatprep.subr.bf16.mxu1 %v3110_v4  ;;  %v3214_v4 = vld [vmem:[%s4430_s13 + $0xf4] ss:$28 sps:$4 sm:$0xff]  }
 0x476   :  { %2221 = vmatpush1.bf16.msra.mxu1 %v3108_v5  ;;  %v3215_v5 = vld [vmem:[%s4430_s13 + $0x2b8] ss:$28 sps:$4 sm:$0xff]  }
 0x477   :  { %2222 = vmatprep.subr.bf16.mxu1 %v3116_v6  ;;  %v3212_v6 = vld [vmem:[%s4430_s13 + $0xf0] ss:$28 sps:$4 sm:$0xff]  }
 0x47a   :  { %2223 = vmatpush1.bf16.msra.mxu1 %v3114_v7  ;;  %v3216_v7 = vld [vmem:[%s4430_s13 + $0xf8] ss:$28 sps:$4 sm:$0xff]  }
 0x47b   :  { %2224 = vmatprep.subr.bf16.mxu1 %v3122_v10  ;;  %v3219_v10 = vld [vmem:[%s4430_s13 + $0x12c] ss:$28 sps:$4 sm:$0xff]  }
 0x47e   :  { %2225 = vmatpush1.bf16.msra.mxu1 %v3120_v12  ;;  %v3220_v12 = vld [vmem:[%s4430_s13 + $0x2f0] ss:$28 sps:$4 sm:$0xff]  }
 0x47f   :  { %2226 = vmatprep.subr.bf16.mxu1 %v3128_v13  ;;  %v3217_v13 = vld [vmem:[%s4430_s13 + $0x128] ss:$28 sps:$4 sm:$0xff]  }
 0x482   :  { %2227 = vmatpush1.bf16.msra.mxu1 %v3126_v14  ;;  %v3221_v14 = vld [vmem:[%s4430_s13 + $0x130] ss:$28 sps:$4 sm:$0xff]  }
 0x483   :  { %2228 = vmatprep.subr.bf16.mxu1 %v3134_v15  ;;  %v3224_v15 = vld [vmem:[%s4430_s13 + $0x164] ss:$28 sps:$4 sm:$0xff]  }
 0x486   :  { %2229 = vmatpush1.bf16.msra.mxu1 %v3132_v16  ;;  %v3225_v16 = vld [vmem:[%s4430_s13 + $0x328] ss:$28 sps:$4 sm:$0xff]  }
 0x487   :  { %2230 = vmatprep.subr.bf16.mxu1 %v3140_v17  ;;  %v3222_v17 = vld [vmem:[%s4430_s13 + $0x160] ss:$28 sps:$4 sm:$0xff]  }
 0x48a   :  { %2231 = vmatpush1.bf16.msra.mxu1 %v3138_v18  ;;  %v3226_v18 = vld [vmem:[%s4430_s13 + $0x168] ss:$28 sps:$4 sm:$0xff]  }
 0x48b   :  { %2232 = vmatprep.subr.bf16.mxu1 %v3146_v42  ;;  %v3229_v42 = vld [vmem:[%s4430_s13 + $0x19c] ss:$28 sps:$4 sm:$0xff]  }
 0x48e   :  { %2233 = vmatpush1.bf16.msra.mxu1 %v3144_v19  ;;  %v3230_v19 = vld [vmem:[%s4430_s13 + $0x360] ss:$28 sps:$4 sm:$0xff]  }
 0x48f   :  { %2234 = vmatprep.subr.bf16.mxu1 %v3152_v20  ;;  %v3227_v20 = vld [vmem:[%s4430_s13 + $0x198] ss:$28 sps:$4 sm:$0xff]  }
 0x492   :  { %2235 = vmatpush1.bf16.msra.mxu1 %v3150_v21  ;;  %v3231_v21 = vld [vmem:[%s4430_s13 + $0x1a0] ss:$28 sps:$4 sm:$0xff]  }
 0x493   :  { %2236 = vmatprep.subr.bf16.mxu1 %v3158_v22  ;;  %v3234_v22 = vld [vmem:[%s4430_s13 + $0x1d4] ss:$28 sps:$4 sm:$0xff]  }
 0x496   :  { %2237 = vmatpush1.bf16.msra.mxu1 %v3156_v23  ;;  %v3232_v23 = vld [vmem:[%s4430_s13 + $0x1d0] ss:$28 sps:$4 sm:$0xff]  }
 0x497   :  { %2238 = vmatprep.subr.bf16.mxu1 %v3164_v24  ;;  %v3237_v24 = vld [vmem:[%s4430_s13 + $0x20c] ss:$28 sps:$4 sm:$0xff]  }
 0x49a   :  { %2239 = vmatpush1.bf16.msra.mxu1 %v3162_v25  ;;  %v3235_v25 = vld [vmem:[%s4430_s13 + $0x208] ss:$28 sps:$4 sm:$0xff]  }
 0x49b   :  { %2240 = vmatprep.subr.bf16.mxu1 %v3170_v26  ;;  %v3240_v26 = vld [vmem:[%s4430_s13 + $0x244] ss:$28 sps:$4 sm:$0xff]  }
 0x49e   :  { %2241 = vmatpush1.bf16.msra.mxu1 %v3168_v27  ;;  %v3238_v27 = vld [vmem:[%s4430_s13 + $0x240] ss:$28 sps:$4 sm:$0xff]  }
 0x49f   :  { %2242 = vmatprep.subr.bf16.mxu1 %v3176_v28  ;;  %v3243_v28 = vld [vmem:[%s4430_s13 + $0x27c] ss:$28 sps:$4 sm:$0xff]  }
 0x4a2   :  { %2243 = vmatpush1.bf16.msra.mxu1 %v3174_v29  ;;  %v3241_v29 = vld [vmem:[%s4430_s13 + $0x278] ss:$28 sps:$4 sm:$0xff]  }
 0x4a3   :  { %2244 = vmatprep.subr.bf16.mxu1 %v3182_v30  ;;  %v3246_v30 = vld [vmem:[%s4430_s13 + $0x2b4] ss:$28 sps:$4 sm:$0xff]  }
 0x4a6   :  { %2245 = vmatpush1.bf16.msra.mxu1 %v3180_v32  ;;  %v3249_v32 = vld [vmem:[%s4430_s13 + $0x2ec] ss:$28 sps:$4 sm:$0xff]  }
 0x4a7   :  { %2246 = vmatprep.subr.bf16.mxu1 %v3188_v34  ;;  %v3252_v34 = vld [vmem:[%s4430_s13 + $0x324] ss:$28 sps:$4 sm:$0xff]  }
 0x4aa   :  { %2247 = vmatpush1.bf16.msra.mxu1 %v3186_v36  ;;  %v3255_v36 = vld [vmem:[%s4430_s13 + $0x35c] ss:$28 sps:$4 sm:$0xff]  }
 0x4ab   :  { %2298 = vmatprep.subr.bf16.mxu1 %v3194_v38 }
 0x540   :  { %v1464_v44 = vpop.f32.mrb[20].mxu1 }
 0x541   :  { %v1465_v45 = vadd.f32 %v1464_v44, %v1343_v41  ;;  %v1466_v46 = vpop.f32.mrb[21].mxu1 }
 0x542   :  { %v1467_v47 = vadd.f32 %v1466_v46, %v1347_v43  ;;  %v1468_v48 = vpop.f32.mrb[22].mxu1 }
 0x543   :  { %v1471_v49 = vmax.f32 %v1465_v45, 0.0  ;;  %v1469_v50 = vpop.f32.mrb[23].mxu1 }
 0x544   :  { %v1472_v51 = vmax.f32 %v1467_v47, 0.0 }
 0x545   :  { %v4220_v55 = vpack.c.bf16 %v1471_v49, %v1471_v49 }
 0x546   :  { %v1474_v52 = vpack.c.bf16 %v1472_v51, %v1472_v51 }
 0x548   :  { %2248 = vmatprep.mubr.bf16.mxu1 %v1474_v52  ;;  %2289 = vmatprep.mubr.bf16.mxu0 %v1474_v52 }
 0x549   :  { %2249 = vmatmul.mubr.bf16.vlgmr.msra.gmra.mrb[24].mxu1 %v4220_v55  ;;  %2290 = vmatmul.mubr.bf16.vlgmr.msra.gmra.mrb[4].mxu0 %v4220_v55 }
 0x54a   :  { %2299 = vmatpush1.bf16.msra.mxu1 %v3192_v53  ;;  %2803 = vmatpush3.bf16.msra.mxu0 %v3196_v54 }
 0x54b   :  { %2330 = vmatprep.mubr.bf16.mxu1 %v1474_v52  ;;  %2371 = vmatprep.mubr.bf16.mxu0 %v1474_v52 }
 0x54c   :  { %2300 = vmatprep.subr.bf16.mxu1 %v3199_v56  ;;  %2804 = vmatprep.subr.bf16.mxu0 %v3200_v57 }
 0x54e   :  { %2301 = vmatpush1.bf16.msra.mxu1 %v3197_v58  ;;  %2805 = vmatpush3.bf16.msra.mxu0 %v3201_v59 }
 0x54f   :  { %2302 = vmatprep.subr.bf16.mxu1 %v3204_v60  ;;  %2806 = vmatprep.subr.bf16.mxu0 %v3205_v61 }
 0x552   :  { %2303 = vmatpush1.bf16.msra.mxu1 %v3202_v62  ;;  %2807 = vmatpush3.bf16.msra.mxu0 %v3206_v63 }
 0x553   :  { %2304 = vmatprep.subr.bf16.mxu1 %v3209_v0  ;;  %2808 = vmatprep.subr.bf16.mxu0 %v3210_v1 }
 0x556   :  { %2305 = vmatpush1.bf16.msra.mxu1 %v3207_v2  ;;  %2809 = vmatpush3.bf16.msra.mxu0 %v3211_v3 }
 0x557   :  { %2306 = vmatprep.subr.bf16.mxu1 %v3214_v4  ;;  %2810 = vmatprep.subr.bf16.mxu0 %v3215_v5 }
 0x55a   :  { %2307 = vmatpush1.bf16.msra.mxu1 %v3212_v6  ;;  %2811 = vmatpush3.bf16.msra.mxu0 %v3216_v7 }
 0x55b   :  { %2308 = vmatprep.subr.bf16.mxu1 %v3219_v10  ;;  %2812 = vmatprep.subr.bf16.mxu0 %v3220_v12 }
 0x55e   :  { %2309 = vmatpush1.bf16.msra.mxu1 %v3217_v13  ;;  %2813 = vmatpush3.bf16.msra.mxu0 %v3221_v14 }
 0x55f   :  { %2310 = vmatprep.subr.bf16.mxu1 %v3224_v15  ;;  %2814 = vmatprep.subr.bf16.mxu0 %v3225_v16 }
 0x562   :  { %2311 = vmatpush1.bf16.msra.mxu1 %v3222_v17  ;;  %2815 = vmatpush3.bf16.msra.mxu0 %v3226_v18 }
 0x563   :  { %2312 = vmatprep.subr.bf16.mxu1 %v3229_v42  ;;  %2816 = vmatprep.subr.bf16.mxu0 %v3230_v19 }
 0x566   :  { %2313 = vmatpush1.bf16.msra.mxu1 %v3227_v20  ;;  %2817 = vmatpush3.bf16.msra.mxu0 %v3231_v21 }
 0x567   :  { %2314 = vmatprep.subr.bf16.mxu1 %v3234_v22 }
 0x569   :  { %2372 = vmatmul.mubr.bf16.vlgmr.msra.gmra.mrb[8].mxu0 %v4220_v55 }
 0x56a   :  { %2315 = vmatpush1.bf16.msra.mxu1 %v3232_v23 }
 0x56b   :  { %2316 = vmatprep.subr.bf16.mxu1 %v3237_v24 }
 0x56e   :  { %2317 = vmatpush1.bf16.msra.mxu1 %v3235_v25 }
 0x56f   :  { %2318 = vmatprep.subr.bf16.mxu1 %v3240_v26 }
 0x572   :  { %2319 = vmatpush1.bf16.msra.mxu1 %v3238_v27 }
 0x573   :  { %2320 = vmatprep.subr.bf16.mxu1 %v3243_v28 }
 0x576   :  { %2321 = vmatpush1.bf16.msra.mxu1 %v3241_v29 }
 0x577   :  { %2322 = vmatprep.subr.bf16.mxu1 %v3246_v30 }
 0x57a   :  { %2323 = vmatpush1.bf16.msra.mxu1 %v3244_v31 }
 0x57b   :  { %2324 = vmatprep.subr.bf16.mxu1 %v3249_v32 }
 0x57e   :  { %2325 = vmatpush1.bf16.msra.mxu1 %v3247_v33 }
 0x57f   :  { %2326 = vmatprep.subr.bf16.mxu1 %v3252_v34 }
 0x582   :  { %2327 = vmatpush1.bf16.msra.mxu1 %v3250_v35 }
 0x583   :  { %2328 = vmatprep.subr.bf16.mxu1 %v3255_v36 }
 0x586   :  { %2329 = vmatpush1.bf16.msra.mxu1 %v3253_v37 }
 0x589   :  { %2331 = vmatmul.mubr.bf16.vlgmr.msra.gmra.mrb[28].mxu1 %v4220_v55 }
 0x58a   :  { %3297 = shalt.err (!%p3294_p4)
}
 0x58b   :  { %s3298_s0 = scalar_lea.hbm %s4434_s17, 128 }
 0x58c   :  { %p3299_p5 = scmp.ne.s32.totalorder %s4434_s17, %s3298_s0  ;;  %p3302_p6 = scmp.lt.u32.totalorder %s3298_s0, %s4434_s17 }
 0x58e   :  { %p3304_p7 = pnand %p3302_p6, %p3299_p5 }
 0x590   :  { %3307 = shalt.err (!%p3304_p7)
}
 0x591   :  { %2450 = dma.vmem_to_hbm [thread:$0]  %s2448_s21, 128, %s4434_s17, [#allocation5]  }
 0x592   :  { %s3384_s23 = smov [#allocation6]   ;;  %s3385_s15 = smov [#allocation7]  }
 0x593   :  { %s2457_s12 = sshll.u32 %s3384_s23, 4  ;;  %s2467_s24 = sshll.u32 %s3385_s15, 4  ;;  %s2458_s12 = int_to_ptr.vmem [resolvable:$true] %s2457_s12  ;;  %s2468_s24 = int_to_ptr.vmem [resolvable:$true] %s2467_s24 }
 0x594   :  { %s3308_s3 = scalar_lea.vmem %s2458_s12, 128  ;;  %p3313_p9 = scmp.lt.s32.totalorder %s2458_s12, %s2458_s12 }
 0x595   :  { %p3309_p8 = scmp.ne.s32.totalorder %s2458_s12, %s3308_s3  ;;  %p3314_p10 = scmp.lt.s32.totalorder %s3308_s3, %s3308_s3 }
 0x597   :  { %p3315_p11 = por %p3314_p10, %p3313_p9 }
 0x599   :  { %p3316_p12 = pnand %p3315_p11, %p3309_p8 }
 0x59b   :  { %3319 = shalt.err (!%p3316_p12)
}
 0x59c   :  { %s3320_s27 = scalar_lea.hbm %s4435_s18, 128 }
 0x59d   :  { %p3321_p13 = scmp.ne.s32.totalorder %s4435_s18, %s3320_s27  ;;  %p3324_p0 = scmp.lt.u32.totalorder %s3320_s27, %s4435_s18 }
 0x59f   :  { %p3326_p1 = pnand %p3324_p0, %p3321_p13 }
 0x5a1   :  { %3329 = shalt.err (!%p3326_p1)
}
 0x5a2   :  { %2460 = dma.vmem_to_hbm [thread:$0]  %s2458_s12, 128, %s4435_s18, [#allocation5]  }
 0x5a3   :  { %s3330_s4 = scalar_lea.vmem %s2468_s24, 128  ;;  %p3335_p3 = scmp.lt.s32.totalorder %s2468_s24, %s2468_s24 }
 0x5a4   :  { %p3331_p2 = scmp.ne.s32.totalorder %s2468_s24, %s3330_s4  ;;  %p3336_p4 = scmp.lt.s32.totalorder %s3330_s4, %s3330_s4 }
 0x5a6   :  { %p3337_p5 = por %p3336_p4, %p3335_p3 }
 0x5a8   :  { %p3338_p6 = pnand %p3337_p5, %p3331_p2 }
 0x5aa   :  { %3341 = shalt.err (!%p3338_p6)
}
 0x5ab   :  { %s3342_s9 = scalar_lea.hbm %s4436_s19, 128 }
 0x5ac   :  { %p3343_p7 = scmp.ne.s32.totalorder %s4436_s19, %s3342_s9  ;;  %p3346_p8 = scmp.lt.u32.totalorder %s3342_s9, %s4436_s19 }
 0x5ae   :  { %p3348_p9 = pnand %p3346_p8, %p3343_p7 }
 0x5b0   :  { %3351 = shalt.err (!%p3348_p9)
}
 0x5b1   :  { %2470 = dma.vmem_to_hbm [thread:$0]  %s2468_s24, 128, %s4436_s19, [#allocation8]   ;;  %v1615_v38 = vsub.s32 2, %v3853_v8  ;;  %v1603_v39 = vld [vmem:[%s4431_s14] sm:$0x7f]  ;;  %v1619_v40 = vsub.s32 3, %v3853_v8 }
 0x5b2   :  { %v1608_v41 = vrot.slane %v1603_v39, %v3856_v9  ;;  %v1612_v44 = vrot.slane %v1603_v39, %v3862_v11  ;;  %v1631_v5 = vsub.s32 6, %v3853_v8  ;;  %v1623_v21 = vsub.s32 4, %v3853_v8  ;;  %s3386_s14 = smov [#allocation2]  }
 0x5b3   :  { %v1616_v43 = vrot.slane %v1603_v39, %v1615_v38  ;;  %v1620_v45 = vrot.slane %v1603_v39, %v1619_v40  ;;  %v1627_v22 = vsub.s32 5, %v3853_v8  ;;  %s2437_s19 = sshll.u32 %s3386_s14, 4  ;;  %s2438_s19 = int_to_ptr.vmem [resolvable:$true] %s2437_s19 }
 0x5b4   :  { %v1632_v13 = vrot.slane %v1603_v39, %v1631_v5  ;;  %v1624_v23 = vrot.slane %v1603_v39, %v1623_v21  ;;  %s3352_s2 = scalar_lea.vmem %s2438_s19, 896  ;;  %p3357_p11 = scmp.lt.s32.totalorder %s2438_s19, %s2438_s19 }
 0x5b5   :  { %v1628_v24 = vrot.slane %v1603_v39, %v1627_v22  ;;  %p3353_p10 = scmp.ne.s32.totalorder %s2438_s19, %s3352_s2  ;;  %p3358_p12 = scmp.lt.s32.totalorder %s3352_s2, %s3352_s2 }
 0x5b7   :  { %p3359_p13 = por %p3358_p12, %p3357_p11 }
 0x5b9   :  { %p3360_p0 = pnand %p3359_p13, %p3353_p10 }
 0x61c   :  { %v2250_v46 = vpop.f32.mrb[24].mxu1  ;;  %v2291_v47 = vpop.f32.mrb[4].mxu0 }
 0x61d   :  { %v2251_v48 = vadd.f32 %v2250_v46, %v1608_v41  ;;  %v2292_v49 = vadd.f32 %v2291_v47, %v1616_v43  ;;  %v2252_v50 = vpop.f32.mrb[25].mxu1  ;;  %v2293_v51 = vpop.f32.mrb[5].mxu0 }
 0x61e   :  { %v2253_v52 = vadd.f32 %v2252_v50, %v1612_v44  ;;  %v2294_v53 = vadd.f32 %v2293_v51, %v1620_v45  ;;  %v2254_v54 = vpop.f32.mrb[26].mxu1  ;;  %v2295_v55 = vpop.f32.mrb[6].mxu0 }
 0x61f   :  { %v2752_v56 = vmul.f32 -1.442695, %v2251_v48  ;;  %v2754_v57 = vmul.f32 -1.442695, %v2292_v49  ;;  %v2255_v58 = vpop.f32.mrb[27].mxu1  ;;  %v2296_v59 = vpop.f32.mrb[7].mxu0 }
 0x620   :  { %v2753_v60 = vmul.f32 -1.442695, %v2253_v52  ;;  %v2755_v9 = vmul.f32 -1.442695, %v2294_v53 }
 0x621   :  { %3258 = vpow2.f32 %v2752_v56 }
 0x622   :  { %3260 = vpow2.f32 %v2754_v57 }
 0x623   :  { %3262 = vpow2.f32 %v2753_v60 }
 0x624   :  { %3264 = vpow2.f32 %v2755_v9 }
 0x62b   :  { %v3259_v11 = vpop.eup %3258 }
 0x62c   :  { %v3261_v61 = vpop.eup %3260  ;;  %v2400_v62 = vadd.f32 1.0, %v3259_v11 }
 0x62d   :  { %v3263_v63 = vpop.eup %3262  ;;  %v2402_v0 = vadd.f32 1.0, %v3261_v61 }
 0x62e   :  { %v3265_v1 = vpop.eup %3264  ;;  %3266 = vrcp.f32 %v2400_v62  ;;  %v2401_v2 = vadd.f32 1.0, %v3263_v63 }
 0x62f   :  { %3268 = vrcp.f32 %v2402_v0  ;;  %v2403_v3 = vadd.f32 1.0, %v3265_v1 }
 0x630   :  { %3270 = vrcp.f32 %v2401_v2 }
 0x631   :  { %3272 = vrcp.f32 %v2403_v3 }
 0x638   :  { %v3267_v4 = vpop.eup %3266 }
 0x639   :  { %v3269_v6 = vpop.eup %3268  ;;  %2421 = vst [vmem:[#allocation2] sm:$0xff] %v3267_v4 }
 0x63a   :  { %v3271_v7 = vpop.eup %3270  ;;  %2423 = vst [vmem:[#allocation2 + $0x10] sm:$0xff] %v3269_v6 }
 0x63b   :  { %v3273_v10 = vpop.eup %3272  ;;  %2422 = vst [vmem:[#allocation2 + $0x8] sm:$0xff] %v3271_v7 }
 0x63c   :  { %2424 = vst [vmem:[#allocation2 + $0x18] sm:$0xff] %v3273_v10  ;;  %v2818_v12 = vpop.f32.mrb[8].mxu0 }
 0x63d   :  { %v2819_v14 = vpop.f32.mrb[9].mxu0 }
 0x63e   :  { %v2820_v15 = vadd.f32 %v2819_v14, %v2818_v12  ;;  %v2821_v16 = vpop.f32.mrb[10].mxu0 }
 0x63f   :  { %v2822_v17 = vpop.f32.mrb[11].mxu0 }
 0x640   :  { %v2374_v18 = vadd.f32 %v2820_v15, %v1632_v13 }
 0x642   :  { %v2758_v42 = vmul.f32 -1.442695, %v2374_v18 }
 0x644   :  { %3274 = vpow2.f32 %v2758_v42 }
 0x64e   :  { %v3275_v19 = vpop.eup %3274 }
 0x64f   :  { %v2406_v20 = vadd.f32 1.0, %v3275_v19 }
 0x651   :  { %3276 = vrcp.f32 %v2406_v20 }
 0x65b   :  { %v3277_v25 = vpop.eup %3276 }
 0x65c   :  { %2427 = vst.msk [vmem:[#allocation2 + $0x30] sm:$0xff] %vm675_vm0, %v3277_v25  ;;  %v2332_v26 = vpop.f32.mrb[28].mxu1 }
 0x65d   :  { %v2333_v27 = vadd.f32 %v2332_v26, %v1624_v23  ;;  %v2334_v28 = vpop.f32.mrb[29].mxu1 }
 0x65e   :  { %v2335_v29 = vadd.f32 %v2334_v28, %v1628_v24  ;;  %v2336_v30 = vpop.f32.mrb[30].mxu1 }
 0x65f   :  { %v2756_v31 = vmul.f32 -1.442695, %v2333_v27  ;;  %v2337_v32 = vpop.f32.mrb[31].mxu1 }
 0x660   :  { %v2757_v33 = vmul.f32 -1.442695, %v2335_v29 }
 0x661   :  { %3278 = vpow2.f32 %v2756_v31 }
 0x662   :  { %3280 = vpow2.f32 %v2757_v33 }
 0x66b   :  { %v3279_v34 = vpop.eup %3278 }
 0x66c   :  { %v3281_v35 = vpop.eup %3280  ;;  %v2404_v36 = vadd.f32 1.0, %v3279_v34 }
 0x66d   :  { %v2405_v37 = vadd.f32 1.0, %v3281_v35 }
 0x66e   :  { %3282 = vrcp.f32 %v2404_v36 }
 0x66f   :  { %3284 = vrcp.f32 %v2405_v37 }
 0x678   :  { %v3283_v8 = vpop.eup %3282 }
 0x679   :  { %v3285_v38 = vpop.eup %3284  ;;  %2425 = vst [vmem:[#allocation2 + $0x20] sm:$0xff] %v3283_v8 }
 0x67a   :  { %2426 = vst [vmem:[#allocation2 + $0x28] sm:$0xff] %v3285_v38 }
 0x67b   :  { %3363 = shalt.err (!%p3360_p0)
}
 0x67c   :  { %s3364_s12 = scalar_lea.hbm %s4433_s16, 896 }
 0x67d   :  { %p3365_p1 = scmp.ne.s32.totalorder %s4433_s16, %s3364_s12  ;;  %p3368_p2 = scmp.lt.u32.totalorder %s3364_s12, %s4433_s16 }
 0x67f   :  { %p3370_p3 = pnand %p3368_p2, %p3365_p1 }
 0x681   :  { %3373 = shalt.err (!%p3370_p3)
}
 0x682   :  { %2440 = dma.vmem_to_hbm [thread:$0]  %s2438_s19, 896, %s4433_s16, [#allocation3]  }
 0x683   :  { %3374 = dma.done.wait [#allocation3], 896  }
 0x684   :  { %3375 = vsyncadd [#allocation3], 4294966400 }
 0x685   :  { %3376 = dma.done.wait [#allocation5], 256  }
 0x686   :  { %3377 = vsyncadd [#allocation5], 4294967040 }
 0x687   :  { %3378 = dma.done.wait [#allocation8], 128  }
 0x688   :  { %3379 = vsyncadd [#allocation8], 4294967168 }
 0x689   :  { %2483 = vsyncpa [#allocation3], 1 }
 0x68a   :  { %2484 = vsyncpa [#allocation5], 1 }
 0x68b   :  { %2485 = vsyncpa [#allocation8], 1 }

</bundles_post_ra>
